<compile_context>
chip_gen: v6e
topology: v6e:2x2x1
jax: 0.10.0
libtpu: 0.0.40
codegen_flags: <defaults>
</compile_context>

<pallas_src>
import math
import numpy as np
import jax
import jax.numpy as jnp
from jax.experimental import pallas as pl
from jax.experimental.pallas import tpu as pltpu

# ---- static configuration -------------------------------------------------------------
D = 16           # data dimension
D2 = D // 2      # = 8  -> exactly one f32 sublane group (aligned coupling split)
H = 32           # hidden width of each coupling-net MLP
K = 4            # number of flows in the ModuleList
TM = 512         # batch tile (lanes); multiple of 128; grid = M // TM
M = 1024         # total batch for the demo; multiple of TM  -> grid=(2,), even for v7x
DPAD = D + 8     # merged output rows: D z-rows + logprob + logdet + 6 padding rows

_LOG2PI = math.log(2.0 * math.pi)


# ---- Pallas kernel: forward pass over one batch tile (transposed layout) --------------
def nf_forward_kernel(xT_ref, w1t_ref, b1_ref, w2t_ref, b2t_ref, out_ref):
    # xT_ref: (D, TM)  — features on sublanes, batch on lanes.
    tm = xT_ref.shape[1]
    x_lo = xT_ref[:D2, :]                               # (D2, TM) features 0..D2
    x_hi = xT_ref[D2:, :]                               # (D2, TM) features D2..D
    logdet = jnp.zeros((1, tm), jnp.float32)

    # Static Python loop over the K flows (flow params stacked along axis 0).
    for k in range(K):
        if k % 2 == 0:                                  # alternate conditioning half
            xa, xb = x_lo, x_hi
        else:
            xa, xb = x_hi, x_lo

        # coupling net (transposed): (H,D2)@(D2,TM) -> tanh -> ONE fused (D,H)@(H,TM) dot
        h = jnp.tanh(
            jnp.dot(w1t_ref[k], xa, preferred_element_type=jnp.float32) + b1_ref[k]
        )                                               # (H, TM)
        st = jnp.dot(w2t_ref[k], h, preferred_element_type=jnp.float32) + b2t_ref[k]
        s = jnp.tanh(st[:D2, :])                        # (D2, TM) bounded log-scale
        t = st[D2:, :]                                  # (D2, TM) shift

        yb = xb * jnp.exp(s) + t                        # affine-couple the other half
        if k % 2 == 0:
            x_hi = yb
        else:
            x_lo = yb

        logdet = logdet + jnp.sum(s, axis=0, keepdims=True)   # (1, TM)

    # Merged output block: z rows, then stats rows, then zero padding (one DMA).
    out_ref[0:D2, :] = x_lo                             # sublane-aligned half writes
    out_ref[D2:D, :] = x_hi
    sumsq = jnp.sum(x_lo * x_lo + x_hi * x_hi, axis=0, keepdims=True)
    out_ref[D:D + 1, :] = -0.5 * sumsq - 0.5 * D * _LOG2PI       # prior_logprob row
    out_ref[D + 1:D + 2, :] = logdet                             # log_det row
    out_ref[D + 2:DPAD, :] = jnp.zeros((DPAD - D - 2, tm), jnp.float32)  # padding rows


# ---- wrapper ---------------------------------------------------------------------------
@jax.jit
def nf_forward(x, w1, b1, w2, b2):
    """Returns (z, prior_logprob, log_det) exactly like NormalizingFlowModel.forward.

    x : (M, D) f32
    w1: (K, D2, H)   b1: (K, 1, H)
    w2: (K, H, D)    b2: (K, 1, D)
    """
    m, d = x.shape
    assert d == D and m % TM == 0, "batch must be a multiple of TM"

    # One-time layout plumbing (cheap XLA ops, outside the kernel). The x.T / out.T pair
    # is kept for (M, D) API parity; cost_estimate lets XLA overlap them with the call.
    xT = x.T                                            # (D, M)  batch -> lanes
    w1t = jnp.swapaxes(w1, 1, 2)                        # (K, H, D2)
    b1t = jnp.swapaxes(b1, 1, 2)                        # (K, H, 1) lane-broadcast bias
    w2t = jnp.swapaxes(w2, 1, 2)                        # (K, D, H) rows[:D2]=scale head
    b2t = jnp.swapaxes(b2, 1, 2)                        # (K, D, 1)

    const3 = lambda i: (0, 0, 0)                        # weights resident across tiles

    flops = 2 * m * K * (D2 * H + H * D)                # matmul FLOPs
    transcendentals = m * K * (H + 2 * D2)              # tanh(h) + tanh(s) + exp(s)
    bytes_accessed = 4 * (m * D + K * (D2 * H + H + H * D + D) + DPAD * m)

    out = pl.pallas_call(
        nf_forward_kernel,
        out_shape=jax.ShapeDtypeStruct((DPAD, m), jnp.float32),
        grid=(m // TM,),
        in_specs=[
            pl.BlockSpec((D, TM), lambda i: (0, i)),    # x tile
            pl.BlockSpec((K, H, D2), const3),
            pl.BlockSpec((K, H, 1), const3),
            pl.BlockSpec((K, D, H), const3),
            pl.BlockSpec((K, D, 1), const3),
        ],
        out_specs=pl.BlockSpec((DPAD, TM), lambda i: (0, i)),
        compiler_params=pltpu.CompilerParams(
            dimension_semantics=("parallel",)),
        cost_estimate=pl.CostEstimate(
            flops=flops, transcendentals=transcendentals,
            bytes_accessed=bytes_accessed),
    )(xT, w1t, b1t, w2t, b2t)

    z = out[:D].T                                       # back to (M, D)
    prior_logprob = out[D]                              # (M,)
    log_det = out[D + 1]                                # (M,)
    return z, prior_logprob, log_det


# ---- pure-JAX reference (mirrors the PyTorch semantics) --------------------------------
def nf_forward_ref(x, w1, b1, w2, b2):
    m = x.shape[0]
    logdet = jnp.zeros((m,), jnp.float32)
    for k in range(K):
        if k % 2 == 0:
            xa, xb = x[:, :D2], x[:, D2:]
        else:
            xa, xb = x[:, D2:], x[:, :D2]
        h = jnp.tanh(xa @ w1[k] + b1[k])
        st = h @ w2[k] + b2[k]
        s, t = jnp.tanh(st[:, :D2]), st[:, D2:]
        yb = xb * jnp.exp(s) + t
        x = jnp.concatenate([xa, yb], 1) if k % 2 == 0 else jnp.concatenate([yb, xa], 1)
        logdet = logdet + jnp.sum(s, axis=1)
    logprob = -0.5 * jnp.sum(x * x, axis=1) - 0.5 * D * _LOG2PI
    return x, logprob, logdet


if __name__ == "__main__":
    key = jax.random.PRNGKey(0)
    kx, kw1, kb1, kw2, kb2 = jax.random.split(key, 5)

    # deterministic synthetic inputs and flow parameters (stacked over the K flows)
    x = jax.random.normal(kx, (M, D), jnp.float32)
    w1 = 0.1 * jax.random.normal(kw1, (K, D2, H), jnp.float32)
    b1 = 0.1 * jax.random.normal(kb1, (K, 1, H), jnp.float32)
    w2 = 0.1 * jax.random.normal(kw2, (K, H, D), jnp.float32)
    b2 = 0.1 * jax.random.normal(kb2, (K, 1, D), jnp.float32)

    z, prior_logprob, log_det = nf_forward(x, w1, b1, w2, b2)
    jax.block_until_ready((z, prior_logprob, log_det))

    z_r, lp_r, ld_r = nf_forward_ref(x, w1, b1, w2, b2)
    np.testing.assert_allclose(np.asarray(z), np.asarray(z_r), rtol=1e-4, atol=1e-4)
    np.testing.assert_allclose(np.asarray(prior_logprob), np.asarray(lp_r),
                               rtol=1e-4, atol=1e-4)
    np.testing.assert_allclose(np.asarray(log_det), np.asarray(ld_r),
                               rtol=1e-4, atol=1e-4)

    # TODO(synk): `inverse`/`sample` paths (prior.sample + reversed flows) not kernelized.
    print("KERNEL_OK")
</pallas_src>

<mosaic_0001>
module attributes {stable_mosaic.version = 11 : i64} {
  func.func @nf_forward_kernel(%arg0: i32, %arg1: memref<16x512xf32, #tpu.memory_space<vmem>>, %arg2: memref<4x32x8xf32, #tpu.memory_space<vmem>>, %arg3: memref<4x32x1xf32, #tpu.memory_space<vmem>>, %arg4: memref<4x16x32xf32, #tpu.memory_space<vmem>>, %arg5: memref<4x16x1xf32, #tpu.memory_space<vmem>>, %arg6: memref<24x512xf32, #tpu.memory_space<vmem>>) attributes {dimension_semantics = [#tpu.dimension_semantics<parallel>], iteration_bounds = array<i64: 2>, scalar_prefetch = 0 : i64, scratch_operands = 0 : i64, tpu.core_type = #tpu.core_type<tc>, window_params = [{transform_indices = @transform_0, window_bounds = array<i64: 16, 512>}, {pipeline_mode = #tpu.pipeline_mode<synchronous>, transform_indices = @transform_1, window_bounds = array<i64: 4, 32, 8>}, {pipeline_mode = #tpu.pipeline_mode<synchronous>, transform_indices = @transform_2, window_bounds = array<i64: 4, 32, 1>}, {pipeline_mode = #tpu.pipeline_mode<synchronous>, transform_indices = @transform_3, window_bounds = array<i64: 4, 16, 32>}, {pipeline_mode = #tpu.pipeline_mode<synchronous>, transform_indices = @transform_4, window_bounds = array<i64: 4, 16, 1>}, {transform_indices = @transform_5, window_bounds = array<i64: 24, 512>}]} {
    %c0 = arith.constant 0 : index
    %c0_0 = arith.constant 0 : index
    %0 = vector.load %arg1[%c0, %c0_0] : memref<16x512xf32, #tpu.memory_space<vmem>>, vector<8x512xf32>
    %c8 = arith.constant 8 : index
    %c0_1 = arith.constant 0 : index
    %1 = vector.load %arg1[%c8, %c0_1] : memref<16x512xf32, #tpu.memory_space<vmem>>, vector<8x512xf32>
    %cst = arith.constant 0.000000e+00 : f32
    %2 = vector.broadcast %cst : f32 to vector<1x512xf32>
    %c0_2 = arith.constant 0 : index
    %c0_3 = arith.constant 0 : index
    %c0_4 = arith.constant 0 : index
    %3 = vector.load %arg2[%c0_2, %c0_3, %c0_4] : memref<4x32x8xf32, #tpu.memory_space<vmem>>, vector<1x32x8xf32>
    %4 = vector.shape_cast %3 : vector<1x32x8xf32> to vector<32x8xf32>
    %cst_5 = arith.constant dense<0.000000e+00> : vector<32x512xf32>
    %5 = tpu.matmul %4, %0, %cst_5 {dimension_numbers = #tpu.dot_dimension_numbers<[1], [0], [0], [1], [0, 0, 1, 1], [], []>} : vector<32x8xf32>, vector<8x512xf32>, vector<32x512xf32> -> vector<32x512xf32>
    %c0_6 = arith.constant 0 : index
    %c0_7 = arith.constant 0 : index
    %c0_8 = arith.constant 0 : index
    %6 = vector.load %arg3[%c0_6, %c0_7, %c0_8] : memref<4x32x1xf32, #tpu.memory_space<vmem>>, vector<1x32x1xf32>
    %7 = vector.shape_cast %6 : vector<1x32x1xf32> to vector<32x1xf32>
    %8 = vector.broadcast %7 : vector<32x1xf32> to vector<32x512xf32>
    %9 = arith.addf %5, %8 : vector<32x512xf32>
    %10 = math.tanh %9 : vector<32x512xf32>
    %c0_9 = arith.constant 0 : index
    %c0_10 = arith.constant 0 : index
    %c0_11 = arith.constant 0 : index
    %11 = vector.load %arg4[%c0_9, %c0_10, %c0_11] : memref<4x16x32xf32, #tpu.memory_space<vmem>>, vector<1x16x32xf32>
    %12 = vector.shape_cast %11 : vector<1x16x32xf32> to vector<16x32xf32>
    %cst_12 = arith.constant dense<0.000000e+00> : vector<16x512xf32>
    %13 = tpu.matmul %12, %10, %cst_12 {dimension_numbers = #tpu.dot_dimension_numbers<[1], [0], [0], [1], [0, 0, 1, 1], [], []>} : vector<16x32xf32>, vector<32x512xf32>, vector<16x512xf32> -> vector<16x512xf32>
    %c0_13 = arith.constant 0 : index
    %c0_14 = arith.constant 0 : index
    %c0_15 = arith.constant 0 : index
    %14 = vector.load %arg5[%c0_13, %c0_14, %c0_15] : memref<4x16x1xf32, #tpu.memory_space<vmem>>, vector<1x16x1xf32>
    %15 = vector.shape_cast %14 : vector<1x16x1xf32> to vector<16x1xf32>
    %16 = vector.broadcast %15 : vector<16x1xf32> to vector<16x512xf32>
    %17 = arith.addf %13, %16 : vector<16x512xf32>
    %18 = vector.extract_strided_slice %17 {offsets = [0, 0], sizes = [8, 512], strides = [1, 1]} : vector<16x512xf32> to vector<8x512xf32>
    %19 = math.tanh %18 : vector<8x512xf32>
    %20 = vector.extract_strided_slice %17 {offsets = [8, 0], sizes = [8, 512], strides = [1, 1]} : vector<16x512xf32> to vector<8x512xf32>
    %21 = math.exp %19 : vector<8x512xf32>
    %22 = arith.mulf %1, %21 : vector<8x512xf32>
    %23 = arith.addf %22, %20 : vector<8x512xf32>
    %cst_16 = arith.constant dense<0.000000e+00> : vector<512xf32>
    %24 = vector.multi_reduction <add>, %19, %cst_16 [0] : vector<8x512xf32> to vector<512xf32>
    %25 = vector.shape_cast %24 : vector<512xf32> to vector<1x512xf32>
    %26 = arith.addf %2, %25 : vector<1x512xf32>
    %c1 = arith.constant 1 : index
    %c0_17 = arith.constant 0 : index
    %c0_18 = arith.constant 0 : index
    %27 = vector.load %arg2[%c1, %c0_17, %c0_18] : memref<4x32x8xf32, #tpu.memory_space<vmem>>, vector<1x32x8xf32>
    %28 = vector.shape_cast %27 : vector<1x32x8xf32> to vector<32x8xf32>
    %cst_19 = arith.constant dense<0.000000e+00> : vector<32x512xf32>
    %29 = tpu.matmul %28, %23, %cst_19 {dimension_numbers = #tpu.dot_dimension_numbers<[1], [0], [0], [1], [0, 0, 1, 1], [], []>} : vector<32x8xf32>, vector<8x512xf32>, vector<32x512xf32> -> vector<32x512xf32>
    %c1_20 = arith.constant 1 : index
    %c0_21 = arith.constant 0 : index
    %c0_22 = arith.constant 0 : index
    %30 = vector.load %arg3[%c1_20, %c0_21, %c0_22] : memref<4x32x1xf32, #tpu.memory_space<vmem>>, vector<1x32x1xf32>
    %31 = vector.shape_cast %30 : vector<1x32x1xf32> to vector<32x1xf32>
    %32 = vector.broadcast %31 : vector<32x1xf32> to vector<32x512xf32>
    %33 = arith.addf %29, %32 : vector<32x512xf32>
    %34 = math.tanh %33 : vector<32x512xf32>
    %c1_23 = arith.constant 1 : index
    %c0_24 = arith.constant 0 : index
    %c0_25 = arith.constant 0 : index
    %35 = vector.load %arg4[%c1_23, %c0_24, %c0_25] : memref<4x16x32xf32, #tpu.memory_space<vmem>>, vector<1x16x32xf32>
    %36 = vector.shape_cast %35 : vector<1x16x32xf32> to vector<16x32xf32>
    %cst_26 = arith.constant dense<0.000000e+00> : vector<16x512xf32>
    %37 = tpu.matmul %36, %34, %cst_26 {dimension_numbers = #tpu.dot_dimension_numbers<[1], [0], [0], [1], [0, 0, 1, 1], [], []>} : vector<16x32xf32>, vector<32x512xf32>, vector<16x512xf32> -> vector<16x512xf32>
    %c1_27 = arith.constant 1 : index
    %c0_28 = arith.constant 0 : index
    %c0_29 = arith.constant 0 : index
    %38 = vector.load %arg5[%c1_27, %c0_28, %c0_29] : memref<4x16x1xf32, #tpu.memory_space<vmem>>, vector<1x16x1xf32>
    %39 = vector.shape_cast %38 : vector<1x16x1xf32> to vector<16x1xf32>
    %40 = vector.broadcast %39 : vector<16x1xf32> to vector<16x512xf32>
    %41 = arith.addf %37, %40 : vector<16x512xf32>
    %42 = vector.extract_strided_slice %41 {offsets = [0, 0], sizes = [8, 512], strides = [1, 1]} : vector<16x512xf32> to vector<8x512xf32>
    %43 = math.tanh %42 : vector<8x512xf32>
    %44 = vector.extract_strided_slice %41 {offsets = [8, 0], sizes = [8, 512], strides = [1, 1]} : vector<16x512xf32> to vector<8x512xf32>
    %45 = math.exp %43 : vector<8x512xf32>
    %46 = arith.mulf %0, %45 : vector<8x512xf32>
    %47 = arith.addf %46, %44 : vector<8x512xf32>
    %cst_30 = arith.constant dense<0.000000e+00> : vector<512xf32>
    %48 = vector.multi_reduction <add>, %43, %cst_30 [0] : vector<8x512xf32> to vector<512xf32>
    %49 = vector.shape_cast %48 : vector<512xf32> to vector<1x512xf32>
    %50 = arith.addf %26, %49 : vector<1x512xf32>
    %c2 = arith.constant 2 : index
    %c0_31 = arith.constant 0 : index
    %c0_32 = arith.constant 0 : index
    %51 = vector.load %arg2[%c2, %c0_31, %c0_32] : memref<4x32x8xf32, #tpu.memory_space<vmem>>, vector<1x32x8xf32>
    %52 = vector.shape_cast %51 : vector<1x32x8xf32> to vector<32x8xf32>
    %cst_33 = arith.constant dense<0.000000e+00> : vector<32x512xf32>
    %53 = tpu.matmul %52, %47, %cst_33 {dimension_numbers = #tpu.dot_dimension_numbers<[1], [0], [0], [1], [0, 0, 1, 1], [], []>} : vector<32x8xf32>, vector<8x512xf32>, vector<32x512xf32> -> vector<32x512xf32>
    %c2_34 = arith.constant 2 : index
    %c0_35 = arith.constant 0 : index
    %c0_36 = arith.constant 0 : index
    %54 = vector.load %arg3[%c2_34, %c0_35, %c0_36] : memref<4x32x1xf32, #tpu.memory_space<vmem>>, vector<1x32x1xf32>
    %55 = vector.shape_cast %54 : vector<1x32x1xf32> to vector<32x1xf32>
    %56 = vector.broadcast %55 : vector<32x1xf32> to vector<32x512xf32>
    %57 = arith.addf %53, %56 : vector<32x512xf32>
    %58 = math.tanh %57 : vector<32x512xf32>
    %c2_37 = arith.constant 2 : index
    %c0_38 = arith.constant 0 : index
    %c0_39 = arith.constant 0 : index
    %59 = vector.load %arg4[%c2_37, %c0_38, %c0_39] : memref<4x16x32xf32, #tpu.memory_space<vmem>>, vector<1x16x32xf32>
    %60 = vector.shape_cast %59 : vector<1x16x32xf32> to vector<16x32xf32>
    %cst_40 = arith.constant dense<0.000000e+00> : vector<16x512xf32>
    %61 = tpu.matmul %60, %58, %cst_40 {dimension_numbers = #tpu.dot_dimension_numbers<[1], [0], [0], [1], [0, 0, 1, 1], [], []>} : vector<16x32xf32>, vector<32x512xf32>, vector<16x512xf32> -> vector<16x512xf32>
    %c2_41 = arith.constant 2 : index
    %c0_42 = arith.constant 0 : index
    %c0_43 = arith.constant 0 : index
    %62 = vector.load %arg5[%c2_41, %c0_42, %c0_43] : memref<4x16x1xf32, #tpu.memory_space<vmem>>, vector<1x16x1xf32>
    %63 = vector.shape_cast %62 : vector<1x16x1xf32> to vector<16x1xf32>
    %64 = vector.broadcast %63 : vector<16x1xf32> to vector<16x512xf32>
    %65 = arith.addf %61, %64 : vector<16x512xf32>
    %66 = vector.extract_strided_slice %65 {offsets = [0, 0], sizes = [8, 512], strides = [1, 1]} : vector<16x512xf32> to vector<8x512xf32>
    %67 = math.tanh %66 : vector<8x512xf32>
    %68 = vector.extract_strided_slice %65 {offsets = [8, 0], sizes = [8, 512], strides = [1, 1]} : vector<16x512xf32> to vector<8x512xf32>
    %69 = math.exp %67 : vector<8x512xf32>
    %70 = arith.mulf %23, %69 : vector<8x512xf32>
    %71 = arith.addf %70, %68 : vector<8x512xf32>
    %cst_44 = arith.constant dense<0.000000e+00> : vector<512xf32>
    %72 = vector.multi_reduction <add>, %67, %cst_44 [0] : vector<8x512xf32> to vector<512xf32>
    %73 = vector.shape_cast %72 : vector<512xf32> to vector<1x512xf32>
    %74 = arith.addf %50, %73 : vector<1x512xf32>
    %c3 = arith.constant 3 : index
    %c0_45 = arith.constant 0 : index
    %c0_46 = arith.constant 0 : index
    %75 = vector.load %arg2[%c3, %c0_45, %c0_46] : memref<4x32x8xf32, #tpu.memory_space<vmem>>, vector<1x32x8xf32>
    %76 = vector.shape_cast %75 : vector<1x32x8xf32> to vector<32x8xf32>
    %cst_47 = arith.constant dense<0.000000e+00> : vector<32x512xf32>
    %77 = tpu.matmul %76, %71, %cst_47 {dimension_numbers = #tpu.dot_dimension_numbers<[1], [0], [0], [1], [0, 0, 1, 1], [], []>} : vector<32x8xf32>, vector<8x512xf32>, vector<32x512xf32> -> vector<32x512xf32>
    %c3_48 = arith.constant 3 : index
    %c0_49 = arith.constant 0 : index
    %c0_50 = arith.constant 0 : index
    %78 = vector.load %arg3[%c3_48, %c0_49, %c0_50] : memref<4x32x1xf32, #tpu.memory_space<vmem>>, vector<1x32x1xf32>
    %79 = vector.shape_cast %78 : vector<1x32x1xf32> to vector<32x1xf32>
    %80 = vector.broadcast %79 : vector<32x1xf32> to vector<32x512xf32>
    %81 = arith.addf %77, %80 : vector<32x512xf32>
    %82 = math.tanh %81 : vector<32x512xf32>
    %c3_51 = arith.constant 3 : index
    %c0_52 = arith.constant 0 : index
    %c0_53 = arith.constant 0 : index
    %83 = vector.load %arg4[%c3_51, %c0_52, %c0_53] : memref<4x16x32xf32, #tpu.memory_space<vmem>>, vector<1x16x32xf32>
    %84 = vector.shape_cast %83 : vector<1x16x32xf32> to vector<16x32xf32>
    %cst_54 = arith.constant dense<0.000000e+00> : vector<16x512xf32>
    %85 = tpu.matmul %84, %82, %cst_54 {dimension_numbers = #tpu.dot_dimension_numbers<[1], [0], [0], [1], [0, 0, 1, 1], [], []>} : vector<16x32xf32>, vector<32x512xf32>, vector<16x512xf32> -> vector<16x512xf32>
    %c3_55 = arith.constant 3 : index
    %c0_56 = arith.constant 0 : index
    %c0_57 = arith.constant 0 : index
    %86 = vector.load %arg5[%c3_55, %c0_56, %c0_57] : memref<4x16x1xf32, #tpu.memory_space<vmem>>, vector<1x16x1xf32>
    %87 = vector.shape_cast %86 : vector<1x16x1xf32> to vector<16x1xf32>
    %88 = vector.broadcast %87 : vector<16x1xf32> to vector<16x512xf32>
    %89 = arith.addf %85, %88 : vector<16x512xf32>
    %90 = vector.extract_strided_slice %89 {offsets = [0, 0], sizes = [8, 512], strides = [1, 1]} : vector<16x512xf32> to vector<8x512xf32>
    %91 = math.tanh %90 : vector<8x512xf32>
    %92 = vector.extract_strided_slice %89 {offsets = [8, 0], sizes = [8, 512], strides = [1, 1]} : vector<16x512xf32> to vector<8x512xf32>
    %93 = math.exp %91 : vector<8x512xf32>
    %94 = arith.mulf %47, %93 : vector<8x512xf32>
    %95 = arith.addf %94, %92 : vector<8x512xf32>
    %cst_58 = arith.constant dense<0.000000e+00> : vector<512xf32>
    %96 = vector.multi_reduction <add>, %91, %cst_58 [0] : vector<8x512xf32> to vector<512xf32>
    %97 = vector.shape_cast %96 : vector<512xf32> to vector<1x512xf32>
    %98 = arith.addf %74, %97 : vector<1x512xf32>
    %c0_59 = arith.constant 0 : index
    %c0_60 = arith.constant 0 : index
    %99 = vector.load %arg6[%c0_59, %c0_60] : memref<24x512xf32, #tpu.memory_space<vmem>>, vector<8x512xf32>
    tpu.vector_store %arg6[%c0_59, %c0_60], %95 {strides = array<i32>} : memref<24x512xf32, #tpu.memory_space<vmem>>, vector<8x512xf32>,
    %c8_61 = arith.constant 8 : index
    %c0_62 = arith.constant 0 : index
    %100 = vector.load %arg6[%c8_61, %c0_62] : memref<24x512xf32, #tpu.memory_space<vmem>>, vector<8x512xf32>
    tpu.vector_store %arg6[%c8_61, %c0_62], %71 {strides = array<i32>} : memref<24x512xf32, #tpu.memory_space<vmem>>, vector<8x512xf32>,
    %101 = arith.mulf %95, %95 : vector<8x512xf32>
    %102 = arith.mulf %71, %71 : vector<8x512xf32>
    %103 = arith.addf %101, %102 : vector<8x512xf32>
    %cst_63 = arith.constant dense<0.000000e+00> : vector<512xf32>
    %104 = vector.multi_reduction <add>, %103, %cst_63 [0] : vector<8x512xf32> to vector<512xf32>
    %105 = vector.shape_cast %104 : vector<512xf32> to vector<1x512xf32>
    %cst_64 = arith.constant -5.000000e-01 : f32
    %106 = vector.broadcast %cst_64 : f32 to vector<1x512xf32>
    %107 = arith.mulf %106, %105 : vector<1x512xf32>
    %cst_65 = arith.constant 14.7030163 : f32
    %108 = vector.broadcast %cst_65 : f32 to vector<1x512xf32>
    %109 = arith.subf %107, %108 : vector<1x512xf32>
    %c16 = arith.constant 16 : index
    %c0_66 = arith.constant 0 : index
    %110 = vector.load %arg6[%c16, %c0_66] : memref<24x512xf32, #tpu.memory_space<vmem>>, vector<1x512xf32>
    tpu.vector_store %arg6[%c16, %c0_66], %109 {strides = array<i32>} : memref<24x512xf32, #tpu.memory_space<vmem>>, vector<1x512xf32>,
    %c17 = arith.constant 17 : index
    %c0_67 = arith.constant 0 : index
    %111 = vector.load %arg6[%c17, %c0_67] : memref<24x512xf32, #tpu.memory_space<vmem>>, vector<1x512xf32>
    tpu.vector_store %arg6[%c17, %c0_67], %98 {strides = array<i32>} : memref<24x512xf32, #tpu.memory_space<vmem>>, vector<1x512xf32>,
    %cst_68 = arith.constant 0.000000e+00 : f32
    %112 = vector.broadcast %cst_68 : f32 to vector<6x512xf32>
    %c18 = arith.constant 18 : index
    %c0_69 = arith.constant 0 : index
    %113 = vector.load %arg6[%c18, %c0_69] : memref<24x512xf32, #tpu.memory_space<vmem>>, vector<6x512xf32>
    tpu.vector_store %arg6[%c18, %c0_69], %112 {strides = array<i32>} : memref<24x512xf32, #tpu.memory_space<vmem>>, vector<6x512xf32>,
    return
  }
  func.func @transform_0(%arg0: i32) -> (i32, i32) {
    %c0_i32 = arith.constant 0 : i32
    %c0_i32_0 = arith.constant 0 : i32
    return %c0_i32, %arg0 : i32, i32
  }
  func.func @transform_1(%arg0: i32) -> (i32, i32, i32) {
    %c0_i32 = arith.constant 0 : i32
    %c0_i32_0 = arith.constant 0 : i32
    %c0_i32_1 = arith.constant 0 : i32
    %c0_i32_2 = arith.constant 0 : i32
    return %c0_i32, %c0_i32_0, %c0_i32_1 : i32, i32, i32
  }
  func.func @transform_2(%arg0: i32) -> (i32, i32, i32) {
    %c0_i32 = arith.constant 0 : i32
    %c0_i32_0 = arith.constant 0 : i32
    %c0_i32_1 = arith.constant 0 : i32
    %c0_i32_2 = arith.constant 0 : i32
    return %c0_i32, %c0_i32_0, %c0_i32_1 : i32, i32, i32
  }
  func.func @transform_3(%arg0: i32) -> (i32, i32, i32) {
    %c0_i32 = arith.constant 0 : i32
    %c0_i32_0 = arith.constant 0 : i32
    %c0_i32_1 = arith.constant 0 : i32
    %c0_i32_2 = arith.constant 0 : i32
    return %c0_i32, %c0_i32_0, %c0_i32_1 : i32, i32, i32
  }
  func.func @transform_4(%arg0: i32) -> (i32, i32, i32) {
    %c0_i32 = arith.constant 0 : i32
    %c0_i32_0 = arith.constant 0 : i32
    %c0_i32_1 = arith.constant 0 : i32
    %c0_i32_2 = arith.constant 0 : i32
    return %c0_i32, %c0_i32_0, %c0_i32_1 : i32, i32, i32
  }
  func.func @transform_5(%arg0: i32) -> (i32, i32) {
    %c0_i32 = arith.constant 0 : i32
    %c0_i32_0 = arith.constant 0 : i32
    return %c0_i32, %arg0 : i32, i32
  }
}

</mosaic_0001>

<bundles_post_ra>
// kernel: nf_forward.1
= control target key start
LH: loop header
LB: loop body
LE: loop exit
PB: predicated region body
PF: predicated region fallthrough
CT: control target
= control target key end

     0   :  { %s2714_s18 = smov 0   ;;  %s2716_s19 = smov 0   ;;  %s3188_s0 = inlined_call_operand.vmem [shape: f32[16,1024], index: 0, kind: input, shape index: {}]   ;;  %s3189_s1 = inlined_call_operand.vmem [shape: f32[4,32,8], index: 1, kind: input, shape index: {}]   ;;  %s3190_s2 = inlined_call_operand.vmem [shape: f32[4,32,1], index: 2, kind: input, shape index: {}]   ;;  %s3191_s3 = inlined_call_operand.vmem [shape: f32[4,16,32], index: 3, kind: input, shape index: {}]   ;;  %s3192_s4 = inlined_call_operand.vmem [shape: f32[4,16,1], index: 4, kind: input, shape index: {}]   ;;  %s3193_s5 = inlined_call_operand.vmem [shape: f32[24,1024], index: 5, kind: output, shape index: {}]  }
   0x1   :  { %s2718_s20 = smov 0  }
   0x2 LB: > { %s2330_s21 = sadd.s32 4294967295, %s2679_s20   ;;  %s2731_s22 = sadd.s32 1, %s2679_s20   ;;  %s2679_s20 = sphi %s2718_s20, %s3199_s20   ;;  %s2675_s19 = sphi %s2716_s19, %s3198_s19   ;;  %s2671_s18 = sphi %s2714_s18, %s3197_s18  }
   0x3   : > { %s19_s23 = ssub.s32 %s2679_s20, %s2731_s22  ;;  %s22_s24 = sadd.s32 1, %s2675_s19 }
   0x4   : > { %p20_p0 = scmp.eq.s32.totalorder %s19_s23, 0  ;;  %p29_p1 = scmp.ne.s32.totalorder %s2675_s19, %s2671_s18 }
   0x5   : > { %p30_p2 = scmp.eq.s32.totalorder %s2679_s20, 0  ;;  %p143_p3 = scmp.eq.s32.totalorder %s2330_s21, 1 }
   0x6   : > { %s2742_s25 = scalar_select %p20_p0, %s2675_s19, %s22_s24  }
   0x7   : > { %p31_p4 = por %p30_p2, %p29_p1  ;;  %p2744_p5 = por %p143_p3, %p29_p1 }
   0x8   : > { %p2333_p6 = scmp.ge.s32.totalorder %s2679_s20, 2 }
   0xa   : > { %177 = sbr.rel (%p2333_p6) target bundleno = 23 (0x17), region = 32 }
   0xf   : > { %180 = sbr.rel (!%p31_p4) target bundleno = 23 (0x17), region = 36  ;;  %s182_s27 = sand.u32 (%p31_p4), 1, %s2675_s19  }
  0x10   : > { %s2433_s28 = sshll.u32 (%p31_p4), %s2679_s20, 5  ;;  %s2334_s29 = sshll.u32 (%p31_p4), %s182_s27, 6 }
  0x11   : > { %s187_s7 = scalar_lea.vmem (%p31_p4), %s3188_s0, %s2433_s28  ;;  %s184_s8 = scalar_lea.vmem (%p31_p4), [#allocation2], %s2334_s29 }
  0x12   : > { %v200_v0 = vld [vmem:[%s187_s7] sm:$0xff] (%p31_p4)  ;;  %v202_v1 = vld [vmem:[%s187_s7 + $0x8] sm:$0xff] (%p31_p4)  ;;  %v204_v2 = vld [vmem:[%s187_s7 + $0x10] sm:$0xff] (%p31_p4) }
  0x13   : > { %201 = vst [vmem:[%s184_s8] sm:$0xff] (%p31_p4), %v200_v0  ;;  %203 = vst [vmem:[%s184_s8 + $0x8] sm:$0xff] (%p31_p4), %v202_v1  ;;  %v206_v3 = vld [vmem:[%s187_s7 + $0x18] sm:$0xff] (%p31_p4)  ;;  %v208_v4 = vld [vmem:[%s187_s7 + $0x40] sm:$0xff] (%p31_p4) }
  0x14   : > { %205 = vst [vmem:[%s184_s8 + $0x10] sm:$0xff] %v204_v2  ;;  %v210_v5 = vld [vmem:[%s187_s7 + $0x48] sm:$0xff]  ;;  %207 = vst [vmem:[%s184_s8 + $0x18] sm:$0xff] %v206_v3  ;;  %v212_v6 = vld [vmem:[%s187_s7 + $0x50] sm:$0xff] }
  0x15   : > { %209 = vst [vmem:[%s184_s8 + $0x20] sm:$0xff] %v208_v4  ;;  %211 = vst [vmem:[%s184_s8 + $0x28] sm:$0xff] %v210_v5  ;;  %v214_v7 = vld [vmem:[%s187_s7 + $0x58] sm:$0xff] }
  0x16   : > { %213 = vst [vmem:[%s184_s8 + $0x30] sm:$0xff] %v212_v6  ;;  %215 = vst [vmem:[%s184_s8 + $0x38] sm:$0xff] %v214_v7 }
  0x17 PF: > { %p2337_p7 = scmp.ge.s32.totalorder %s2679_s20, 1  ;;  %p220_p8 = scmp.lt.s32.totalorder %s2679_s20, 3 }
  0x19   : > { %p221_p9 = pnand %p2337_p7, %p220_p8 }
  0x1a   : > { %s227_s9 = sand.u32 (!%p221_p9), 1, %s2671_s18  }
  0x1b   : > { %224 = sbr.rel (%p221_p9) target bundleno = 1931 (0x78b), region = 59  ;;  %s2338_s10 = sshll.u32 (!%p221_p9), %s227_s9, 6 }
  0x1c   : > { %s2435_s11 = smul.u32 (!%p221_p9), 96, %s227_s9  ;;  %s2768_s18 = scalar_lea.vmem (!%p221_p9), [#allocation2], %s2338_s10 }
  0x1e   : > { %s2780_s23 = scalar_lea.vmem (!%p221_p9), [#allocation3], %s2435_s11 }
  0x20   : > { %v2681_v8 = vmov 0.0   ;;  %v270_v9 = vld [vmem:[%s3190_s2 + $0x18] sm:$0xff]  ;;  %v263_v10 = vld [vmem:[%s3189_s1] sm:$0xff]  ;;  %v2682_v11 = vmov 0   ;;  %v268_v12 = vld [vmem:[%s3190_s2 + $0x8] sm:$0xff]  ;;  %vm291_vm0 = vcmask 64512  }
  0x21   : > { %368 = vmatprep.mubr.f32.mxu0 %v2681_v8  ;;  %457 = vmatprep.mubr.f32.mxu1 %v2681_v8  ;;  %v2771_v13 = vld [vmem:[%s2768_s18 + $0x8] sm:$0xff]  ;;  %v2774_v14 = vld [vmem:[%s2768_s18 + $0x18] sm:$0xff]  ;;  %v2777_v15 = vld [vmem:[%s2768_s18] sm:$0xff]  ;;  %2221 = vst [vmem:[%s2780_s23 + $0x40] sm:$0xfc] %v2681_v8  ;;  %vm512_vm1 = vcmask 261120  }
  0x22   : > { %2463 = vset.pattern.permute.xlu0 %v2682_v11  ;;  %2464 = vset.pattern.permute.xlu1 %v2682_v11  ;;  %2222 = vst [vmem:[%s2780_s23 + $0x48] sm:$0xfc] %v2681_v8  ;;  %2223 = vst [vmem:[%s2780_s23 + $0x50] sm:$0xfc] %v2681_v8  ;;  %v2792_v16 = vld [vmem:[%s2768_s18 + $0x10] sm:$0xff]  ;;  %v267_v18 = vld [vmem:[%s3190_s2] sm:$0xff] }
  0x23   : > { %288 = vperm.xlu0 %2463, %v270_v9   ;;  %278 = vperm.xlu1 %2464, %v268_v12   ;;  %2224 = vst [vmem:[%s2780_s23 + $0x58] sm:$0xfc] %v2681_v8  ;;  %v269_v17 = vld [vmem:[%s3190_s2 + $0x10] sm:$0xff]  ;;  %v264_v19 = vld [vmem:[%s3189_s1 + $0x8] sm:$0xff]  ;;  %v500_v20 = vld [vmem:[%s3192_s4] sm:$0xff]  ;;  %s2434_s29 = sshll.u32 (%p2744_p5), %s2330_s21, 5 }
  0x24   : > { %334 = vmatprep.subr.mxu0 %v2771_v13  ;;  %423 = vmatprep.subr.mxu1 %v2774_v14  ;;  %v501_v21 = vld [vmem:[%s3192_s4 + $0x8] sm:$0xff]  ;;  %v265_v22 = vld [vmem:[%s3189_s1 + $0x10] sm:$0xff]  ;;  %v2358_v23 = vld [vmem:[%s3190_s2 + $0x38] sm:$0xff]  ;;  %s2234_s26 = scalar_lea.vmem (%p2744_p5), %s3193_s5, %s2434_s29 }
  0x25   : > { %335 = vmatpush1.msra.mxu0 %v2777_v15  ;;  %424 = vmatpush1.msra.mxu1 %v2792_v16  ;;  %v2357_v24 = vld [vmem:[%s3190_s2 + $0x30] sm:$0xff]  ;;  %v266_v25 = vld [vmem:[%s3189_s1 + $0x18] sm:$0xff]  ;;  %v2356_v26 = vld [vmem:[%s3190_s2 + $0x28] sm:$0xff] }
  0x26   : > { %2339 = vmatmul.mubr.msk.f32.vlgmr.msra.gmra.mxu0 %vm291_vm0, %v263_v10  ;;  %2343 = vmatmul.mubr.msk.f32.vlgmr.msra.gmra.mxu1 %vm291_vm0, %v263_v10  ;;  %v2355_v27 = vld [vmem:[%s3190_s2 + $0x20] sm:$0xff]  ;;  %v2369_v28 = vld [vmem:[%s3192_s4 + $0x10] sm:$0xff]  ;;  %v2370_v29 = vld [vmem:[%s3192_s4 + $0x18] sm:$0xff] }
  0x27   : > { %374 = vmatprep.mubr.f32.mxu0 %v2681_v8  ;;  %463 = vmatprep.mubr.f32.mxu1 %v2681_v8  ;;  %v2382_v30 = vld [vmem:[%s3190_s2 + $0x58] sm:$0xff]  ;;  %v2381_v31 = vld [vmem:[%s3190_s2 + $0x50] sm:$0xff]  ;;  %v2380_v32 = vld [vmem:[%s3190_s2 + $0x48] sm:$0xff] }
  0x28   : > { %283 = vperm.xlu0 %2463, %v269_v17   ;;  %273 = vperm.xlu1 %2464, %v267_v18   ;;  %v2379_v33 = vld [vmem:[%s3190_s2 + $0x40] sm:$0xff]  ;;  %v2394_v35 = vld [vmem:[%s3192_s4 + $0x28] sm:$0xff]  ;;  %v2406_v36 = vld [vmem:[%s3190_s2 + $0x78] sm:$0xff] }
  0x29   : > { %v2393_v34 = vld [vmem:[%s3192_s4 + $0x20] sm:$0xff]  ;;  %v2405_v37 = vld [vmem:[%s3190_s2 + $0x70] sm:$0xff]  ;;  %v2404_v38 = vld [vmem:[%s3190_s2 + $0x68] sm:$0xff] }
  0x2a   : > { %2340 = vmatmul.mubr.msk.f32.gmra.mxu0 %vm291_vm0, %v264_v19  ;;  %2344 = vmatmul.mubr.msk.f32.gmra.mxu1 %vm291_vm0, %v264_v19  ;;  %v2403_v39 = vld [vmem:[%s3190_s2 + $0x60] sm:$0xff]  ;;  %v2417_v40 = vld [vmem:[%s3192_s4 + $0x30] sm:$0xff]  ;;  %v2418_v41 = vld [vmem:[%s3192_s4 + $0x38] sm:$0xff] }
  0x2b   : > { %380 = vmatprep.mubr.f32.mxu0 %v2681_v8  ;;  %469 = vmatprep.mubr.f32.mxu1 %v2681_v8 }
  0x2c   : > { %504 = vperm.xlu0 %2463, %v500_v20   ;;  %509 = vperm.xlu1 %2464, %v501_v21  }
  0x2e   : > { %2341 = vmatmul.mubr.msk.f32.gmra.mxu0 %vm291_vm0, %v265_v22  ;;  %2345 = vmatmul.mubr.msk.f32.gmra.mxu1 %vm291_vm0, %v265_v22 }
  0x2f   : > { %386 = vmatprep.mubr.f32.mxu0 %v2681_v8  ;;  %475 = vmatprep.mubr.f32.mxu1 %v2681_v8 }
  0x30   : > { %748 = vperm.xlu0 %2463, %v2358_v23   ;;  %743 = vperm.xlu1 %2464, %v2357_v24  }
  0x32   : > { %2342 = vmatmul.mubr.msk.f32.gmra.mxu0 %vm291_vm0, %v266_v25  ;;  %2346 = vmatmul.mubr.msk.f32.gmra.mxu1 %vm291_vm0, %v266_v25 }
  0x33   : > { %583 = vmatprep.mubr.f32.mxu0 %v2681_v8  ;;  %660 = vmatprep.mubr.f32.mxu1 %v2681_v8 }
  0x34   : > { %738 = vperm.xlu0 %2463, %v2356_v26   ;;  %733 = vperm.xlu1 %2464, %v2355_v27  }
  0x38   : > { %965 = vperm.xlu0 %2463, %v2369_v28   ;;  %970 = vperm.xlu1 %2464, %v2370_v29  }
  0x3c   : > { %1208 = vperm.xlu0 %2463, %v2382_v30   ;;  %1203 = vperm.xlu1 %2464, %v2381_v31  }
  0x40   : > { %1198 = vperm.xlu0 %2463, %v2380_v32   ;;  %1193 = vperm.xlu1 %2464, %v2379_v33   ;;  %v498_v33 = vld [vmem:[%s3191_s3] sm:$0xff] }
  0x44   : > { %1425 = vperm.xlu0 %2463, %v2393_v34   ;;  %1430 = vperm.xlu1 %2464, %v2394_v35  }
  0x48   : > { %1668 = vperm.xlu0 %2463, %v2406_v36   ;;  %1663 = vperm.xlu1 %2464, %v2405_v37   ;;  %v499_v36 = vld [vmem:[%s3191_s3 + $0x8] sm:$0xff] }
  0x4c   : > { %1658 = vperm.xlu0 %2463, %v2404_v38   ;;  %1653 = vperm.xlu1 %2464, %v2403_v39  }
  0x50   : > { %1885 = vperm.xlu0 %2463, %v2417_v40   ;;  %1890 = vperm.xlu1 %2464, %v2418_v41  }
  0x9e   : > { %v279_v42 = vpop.permute.xlu1 %278  ;;  %v289_v47 = vpop.permute.xlu0 %288 }
  0xa3   : > { %v274_v50 = vpop.permute.xlu1 %273  ;;  %v284_v58 = vpop.permute.xlu0 %283 }
  0xa7   : > { %v505_v37 = vpop.permute.xlu0 %504 }
  0xe6   : > { %v370_v43 = vpop.f32.mrf.mxu0  ;;  %v459_v44 = vpop.f32.mrf.mxu1 }
  0xe7   : > { %v371_v51 = vadd.f32 %v370_v43, %v274_v50  ;;  %v460_v18 = vadd.f32 %v459_v44, %v274_v50 }
  0xe8   : > { %v372_v45 = vpop.f32.mrf.mxu0  ;;  %v461_v46 = vpop.f32.mrf.mxu1 }
  0xe9   : > { %v373_v54 = vadd.f32 %v372_v45, %v274_v50  ;;  %2465 = vtanh.f32 %v371_v51  ;;  %v462_v17 = vadd.f32 %v461_v46, %v274_v50 }
  0xea   : > { %v376_v48 = vpop.f32.mrf.mxu0  ;;  %v465_v49 = vpop.f32.mrf.mxu1 }
  0xeb   : > { %v377_v55 = vadd.f32 %v376_v48, %v279_v42  ;;  %2467 = vtanh.f32 %v373_v54  ;;  %v466_v12 = vadd.f32 %v465_v49, %v279_v42 }
  0xec   : > { %v378_v52 = vpop.f32.mrf.mxu0  ;;  %v467_v53 = vpop.f32.mrf.mxu1 }
  0xed   : > { %v379_v59 = vadd.f32 %v378_v52, %v279_v42  ;;  %2469 = vtanh.f32 %v377_v55  ;;  %v468_v11 = vadd.f32 %v467_v53, %v279_v42 }
  0xee   : > { %v382_v56 = vpop.f32.mrf.mxu0  ;;  %v471_v57 = vpop.f32.mrf.mxu1 }
  0xef   : > { %v383_v60 = vadd.f32 %v382_v56, %v284_v58  ;;  %2471 = vtanh.f32 %v379_v59  ;;  %v472_v10 = vadd.f32 %v471_v57, %v284_v58  ;;  %v259_v56 = vld [vmem:[%s2768_s18 + $0x20] sm:$0xff]  ;;  %v260_v59 = vld [vmem:[%s2768_s18 + $0x28] sm:$0xff] }
  0xf0   : > { %v384_v61 = vpop.f32.mrf.mxu0  ;;  %v473_v62 = vpop.f32.mrf.mxu1 }
  0xf1   : > { %v385_v63 = vadd.f32 %v384_v61, %v284_v58  ;;  %2473 = vtanh.f32 %v383_v60  ;;  %v474_v9 = vadd.f32 %v473_v62, %v284_v58  ;;  %v261_v58 = vld [vmem:[%s2768_s18 + $0x30] sm:$0xff]  ;;  %v262_v62 = vld [vmem:[%s2768_s18 + $0x38] sm:$0xff] }
  0xf2   : > { %v388_v0 = vpop.f32.mrf.mxu0  ;;  %v477_v1 = vpop.f32.mrf.mxu1 }
  0xf3   : > { %v389_v2 = vadd.f32 %v388_v0, %v289_v47  ;;  %2475 = vtanh.f32 %v385_v63  ;;  %v478_v5 = vadd.f32 %v477_v1, %v289_v47  ;;  %v510_v1 = vpop.permute.xlu1 %509 }
  0xf4   : > { %v390_v3 = vpop.f32.mrf.mxu0  ;;  %v479_v4 = vpop.f32.mrf.mxu1 }
  0xf5   : > { %v391_v6 = vadd.f32 %v390_v3, %v289_v47  ;;  %v480_v7 = vadd.f32 %v479_v4, %v289_v47  ;;  %2477 = vtanh.f32 %v389_v2 }
  0xf6   : > { %v2466_v19 = vpop.eup %2465 }
  0xf7   : > { %2479 = vtanh.f32 %v391_v6 }
  0xf8   : > { %2481 = vtanh.f32 %v480_v7  ;;  %v2468_v20 = vpop.eup %2467 }
  0xf9   : > { %2483 = vtanh.f32 %v478_v5 }
  0xfa   : > { %2485 = vtanh.f32 %v474_v9  ;;  %v2470_v21 = vpop.eup %2469 }
  0xfb   : > { %2487 = vtanh.f32 %v472_v10 }
  0xfc   : > { %2489 = vtanh.f32 %v468_v11  ;;  %v2472_v22 = vpop.eup %2471 }
  0xfd   : > { %2491 = vtanh.f32 %v466_v12 }
  0xfe   : > { %2493 = vtanh.f32 %v462_v17  ;;  %v2474_v23 = vpop.eup %2473 }
  0xff   : > { %2495 = vtanh.f32 %v460_v18 }
 0x100   : > { %v2476_v24 = vpop.eup %2475 }
 0x102   : > { %v2478_v25 = vpop.eup %2477 }
 0x104   : > { %v2480_v26 = vpop.eup %2479 }
 0x105   : > { %v2482_v27 = vpop.eup %2481  ;;  %543 = vmatprep.subr.mxu0 %v2480_v26  ;;  %v749_v26 = vpop.permute.xlu0 %748 }
 0x106   : > { %v2484_v28 = vpop.eup %2483  ;;  %620 = vmatprep.subr.mxu1 %v2482_v27  ;;  %544 = vmatpush1.msra.mxu0 %v2478_v25 }
 0x107   : > { %v2486_v29 = vpop.eup %2485  ;;  %621 = vmatpush1.msra.mxu1 %v2484_v28  ;;  %545 = vmatprep.subr.mxu0 %v2476_v24  ;;  %v744_v24 = vpop.permute.xlu1 %743 }
 0x108   : > { %v2488_v30 = vpop.eup %2487  ;;  %622 = vmatprep.subr.mxu1 %v2486_v29  ;;  %546 = vmatpush1.msra.mxu0 %v2474_v23  ;;  %v2354_v23 = vld [vmem:[%s3189_s1 + $0x38] sm:$0xff] }
 0x109   : > { %v2490_v31 = vpop.eup %2489  ;;  %623 = vmatpush1.msra.mxu1 %v2488_v30  ;;  %547 = vmatprep.subr.mxu0 %v2472_v22  ;;  %v2353_v22 = vld [vmem:[%s3189_s1 + $0x30] sm:$0xff] }
 0x10a   : > { %v2492_v32 = vpop.eup %2491  ;;  %624 = vmatprep.subr.mxu1 %v2490_v31  ;;  %548 = vmatpush1.msra.mxu0 %v2470_v21  ;;  %v2352_v21 = vld [vmem:[%s3189_s1 + $0x28] sm:$0xff] }
 0x10b   : > { %v2494_v34 = vpop.eup %2493  ;;  %625 = vmatpush1.msra.mxu1 %v2492_v32  ;;  %549 = vmatprep.subr.mxu0 %v2468_v20  ;;  %v734_v31 = vpop.permute.xlu1 %733 }
 0x10c   : > { %v2496_v35 = vpop.eup %2495  ;;  %626 = vmatprep.subr.mxu1 %v2494_v34  ;;  %550 = vmatpush1.msra.mxu0 %v2466_v19  ;;  %v2351_v19 = vld [vmem:[%s3189_s1 + $0x20] sm:$0xff] }
 0x10d   : > { %627 = vmatpush1.msra.mxu1 %v2496_v35  ;;  %2347 = vmatmul.mubr.msk.f32.vlgmr.msra.gmra.mxu0 %vm512_vm1, %v498_v33  ;;  %v739_v35 = vpop.permute.xlu0 %738 }
 0x10e   : > { %2349 = vmatmul.mubr.msk.f32.vlgmr.msra.gmra.mxu1 %vm512_vm1, %v498_v33  ;;  %589 = vmatprep.mubr.f32.mxu0 %v2681_v8 }
 0x10f   : > { %666 = vmatprep.mubr.f32.mxu1 %v2681_v8 }
 0x111   : > { %2348 = vmatmul.mubr.msk.f32.gmra.mxu0 %vm512_vm1, %v499_v36 }
 0x112   : > { %2350 = vmatmul.mubr.msk.f32.gmra.mxu1 %vm512_vm1, %v499_v36  ;;  %827 = vmatprep.mubr.f32.mxu0 %v2681_v8 }
 0x113   : > { %916 = vmatprep.mubr.f32.mxu1 %v2681_v8 }
 0x1cd   : > { %v585_v38 = vpop.f32.mrf.mxu0 }
 0x1ce   : > { %v586_v39 = vadd.f32 %v585_v38, %v505_v37  ;;  %v662_v40 = vpop.f32.mrf.mxu1 }
 0x1cf   : > { %v663_v41 = vadd.f32 %v662_v40, %v505_v37  ;;  %v587_v42 = vpop.f32.mrf.mxu0 }
 0x1d0   : > { %2497 = vtanh.f32 %v586_v39  ;;  %v588_v43 = vadd.f32 %v587_v42, %v505_v37  ;;  %v664_v44 = vpop.f32.mrf.mxu1 }
 0x1d1   : > { %2499 = vtanh.f32 %v663_v41  ;;  %v665_v45 = vadd.f32 %v664_v44, %v505_v37  ;;  %v591_v54 = vpop.f32.mrf.mxu0 }
 0x1d2   : > { %2501 = vtanh.f32 %v588_v43  ;;  %v668_v55 = vpop.f32.mrf.mxu1  ;;  %v592_v7 = vadd.f32 %v591_v54, %v510_v1 }
 0x1d3   : > { %2503 = vtanh.f32 %v665_v45  ;;  %v593_v60 = vpop.f32.mrf.mxu0  ;;  %v669_v11 = vadd.f32 %v668_v55, %v510_v1 }
 0x1d4   : > { %v670_v63 = vpop.f32.mrf.mxu1  ;;  %v594_v5 = vadd.f32 %v593_v60, %v510_v1 }
 0x1d5   : > { %v671_v9 = vadd.f32 %v670_v63, %v510_v1 }
 0x1dd   : > { %v2901_v46 = vpop.eup %2497 }
 0x1de   : > { %v2903_v47 = vpop.eup %2499  ;;  %v677_v48 = vmul.f32 1.442695, %v2901_v46 }
 0x1df   : > { %v2906_v49 = vpop.eup %2501  ;;  %v681_v50 = vmul.f32 1.442695, %v2903_v47 }
 0x1e0   : > { %v2909_v51 = vpop.eup %2503  ;;  %2505 = vpow2.f32 %v677_v48  ;;  %v679_v52 = vmul.f32 1.442695, %v2906_v49 }
 0x1e1   : > { %2507 = vpow2.f32 %v681_v50  ;;  %v683_v53 = vmul.f32 1.442695, %v2909_v51 }
 0x1e2   : > { %2509 = vpow2.f32 %v679_v52 }
 0x1e3   : > { %2511 = vpow2.f32 %v683_v53 }
 0x1ed   : > { %v2506_v57 = vpop.eup %2505 }
 0x1ee   : > { %v2508_v61 = vpop.eup %2507  ;;  %v685_v2 = vmul.f32 %v2506_v57, %v259_v56 }
 0x1ef   : > { %v2510_v0 = vpop.eup %2509  ;;  %v687_v4 = vmul.f32 %v2508_v61, %v261_v58 }
 0x1f0   : > { %v2512_v3 = vpop.eup %2511  ;;  %v686_v6 = vmul.f32 %v2510_v0, %v260_v59  ;;  %v2919_v17 = vadd.f32 %v685_v2, %v592_v7 }
 0x1f1   : > { %v688_v10 = vmul.f32 %v2512_v3, %v262_v62  ;;  %v2926_v20 = vadd.f32 %v687_v4, %v669_v11 }
 0x1f2   : > { %v2917_v12 = vadd.f32 %v686_v6, %v594_v5 }
 0x1f3   : > { %v2921_v18 = vadd.f32 %v688_v10, %v671_v9 }
 0x1f4   : > { %793 = vmatprep.subr.mxu0 %v2917_v12 }
 0x1f5   : > { %882 = vmatprep.subr.mxu1 %v2921_v18  ;;  %794 = vmatpush1.msra.mxu0 %v2919_v17 }
 0x1f6   : > { %883 = vmatpush1.msra.mxu1 %v2926_v20  ;;  %2359 = vmatmul.mubr.msk.f32.vlgmr.msra.gmra.mxu0 %vm291_vm0, %v2351_v19 }
 0x1f7   : > { %2363 = vmatmul.mubr.msk.f32.vlgmr.msra.gmra.mxu1 %vm291_vm0, %v2351_v19  ;;  %833 = vmatprep.mubr.f32.mxu0 %v2681_v8 }
 0x1f8   : > { %922 = vmatprep.mubr.f32.mxu1 %v2681_v8 }
 0x1fa   : > { %2360 = vmatmul.mubr.msk.f32.gmra.mxu0 %vm291_vm0, %v2352_v21 }
 0x1fb   : > { %2364 = vmatmul.mubr.msk.f32.gmra.mxu1 %vm291_vm0, %v2352_v21  ;;  %839 = vmatprep.mubr.f32.mxu0 %v2681_v8 }
 0x1fc   : > { %928 = vmatprep.mubr.f32.mxu1 %v2681_v8 }
 0x1fe   : > { %2361 = vmatmul.mubr.msk.f32.gmra.mxu0 %vm291_vm0, %v2353_v22 }
 0x1ff   : > { %2365 = vmatmul.mubr.msk.f32.gmra.mxu1 %vm291_vm0, %v2353_v22  ;;  %845 = vmatprep.mubr.f32.mxu0 %v2681_v8 }
 0x200   : > { %934 = vmatprep.mubr.f32.mxu1 %v2681_v8 }
 0x202   : > { %2362 = vmatmul.mubr.msk.f32.gmra.mxu0 %vm291_vm0, %v2354_v23 }
 0x203   : > { %2366 = vmatmul.mubr.msk.f32.gmra.mxu1 %vm291_vm0, %v2354_v23  ;;  %1043 = vmatprep.mubr.f32.mxu0 %v2681_v8  ;;  %v2367_v23 = vld [vmem:[%s3191_s3 + $0x10] sm:$0xff] }
 0x204   : > { %1120 = vmatprep.mubr.f32.mxu1 %v2681_v8 }
 0x2b6   : > { %v829_v25 = vpop.f32.mrf.mxu0 }
 0x2b7   : > { %v918_v27 = vpop.f32.mrf.mxu1  ;;  %v830_v33 = vadd.f32 %v829_v25, %v734_v31 }
 0x2b8   : > { %v831_v28 = vpop.f32.mrf.mxu0  ;;  %v919_v63 = vadd.f32 %v918_v27, %v734_v31  ;;  %v966_v27 = vpop.permute.xlu0 %965 }
 0x2b9   : > { %v920_v29 = vpop.f32.mrf.mxu1  ;;  %v832_v36 = vadd.f32 %v831_v28, %v734_v31  ;;  %2513 = vtanh.f32 %v830_v33 }
 0x2ba   : > { %v835_v30 = vpop.f32.mrf.mxu0  ;;  %v921_v62 = vadd.f32 %v920_v29, %v734_v31 }
 0x2bb   : > { %v924_v32 = vpop.f32.mrf.mxu1  ;;  %v836_v38 = vadd.f32 %v835_v30, %v739_v35  ;;  %2515 = vtanh.f32 %v832_v36  ;;  %v693_v36 = vrot.slane %v2901_v46, 4 }
 0x2bc   : > { %v837_v34 = vpop.f32.mrf.mxu0  ;;  %v925_v61 = vadd.f32 %v924_v32, %v739_v35 }
 0x2bd   : > { %v926_v37 = vpop.f32.mrf.mxu1  ;;  %v838_v40 = vadd.f32 %v837_v34, %v739_v35  ;;  %2517 = vtanh.f32 %v836_v38  ;;  %v694_v38 = vadd.f32 %v2901_v46, %v693_v36 }
 0x2be   : > { %v841_v39 = vpop.f32.mrf.mxu0  ;;  %v927_v60 = vadd.f32 %v926_v37, %v739_v35  ;;  %v705_v37 = vrot.slane %v2903_v47, 4 }
 0x2bf   : > { %v930_v41 = vpop.f32.mrf.mxu1  ;;  %v842_v42 = vadd.f32 %v841_v39, %v744_v24  ;;  %2519 = vtanh.f32 %v838_v40  ;;  %v699_v39 = vrot.slane %v2906_v49, 4 }
 0x2c0   : > { %v843_v43 = vpop.f32.mrf.mxu0  ;;  %v931_v59 = vadd.f32 %v930_v41, %v744_v24  ;;  %v706_v40 = vadd.f32 %v2903_v47, %v705_v37  ;;  %v711_v41 = vrot.slane %v2909_v51, 4 }
 0x2c1   : > { %v844_v44 = vadd.f32 %v843_v43, %v744_v24  ;;  %v932_v45 = vpop.f32.mrf.mxu1  ;;  %2521 = vtanh.f32 %v842_v42  ;;  %v695_v42 = vrot.slane %v694_v38, 2  ;;  %v700_v43 = vadd.f32 %v2906_v49, %v699_v39 }
 0x2c2   : > { %v847_v48 = vpop.f32.mrf.mxu0  ;;  %v933_v57 = vadd.f32 %v932_v45, %v744_v24  ;;  %v712_v45 = vadd.f32 %v2909_v51, %v711_v41 }
 0x2c3   : > { %v848_v50 = vadd.f32 %v847_v48, %v749_v26  ;;  %v936_v52 = vpop.f32.mrf.mxu1  ;;  %2523 = vtanh.f32 %v844_v44  ;;  %v707_v44 = vrot.slane %v706_v40, 2 }
 0x2c4   : > { %v849_v53 = vpop.f32.mrf.mxu0  ;;  %v937_v54 = vadd.f32 %v936_v52, %v749_v26  ;;  %v696_v52 = vadd.f32 %v695_v42, %v694_v38 }
 0x2c5   : > { %v850_v55 = vadd.f32 %v849_v53, %v749_v26  ;;  %v938_v56 = vpop.f32.mrf.mxu1  ;;  %2525 = vtanh.f32 %v848_v50  ;;  %v701_v53 = vrot.slane %v700_v43, 2  ;;  %v708_v46 = vadd.f32 %v707_v44, %v706_v40 }
 0x2c6   : > { %v939_v58 = vadd.f32 %v938_v56, %v749_v26  ;;  %v2514_v0 = vpop.eup %2513  ;;  %v2368_v26 = vld [vmem:[%s3191_s3 + $0x18] sm:$0xff] }
 0x2c7   : > { %2527 = vtanh.f32 %v850_v55 }
 0x2c8   : > { %2529 = vtanh.f32 %v939_v58  ;;  %v2516_v1 = vpop.eup %2515 }
 0x2c9   : > { %2531 = vtanh.f32 %v937_v54 }
 0x2ca   : > { %2533 = vtanh.f32 %v933_v57  ;;  %v2518_v2 = vpop.eup %2517  ;;  %v713_v57 = vrot.slane %v712_v45, 2 }
 0x2cb   : > { %2535 = vtanh.f32 %v931_v59 }
 0x2cc   : > { %2537 = vtanh.f32 %v927_v60  ;;  %v2520_v3 = vpop.eup %2519 }
 0x2cd   : > { %2539 = vtanh.f32 %v925_v61 }
 0x2ce   : > { %2541 = vtanh.f32 %v921_v62  ;;  %v2522_v4 = vpop.eup %2521 }
 0x2cf   : > { %2543 = vtanh.f32 %v919_v63 }
 0x2d0   : > { %v2524_v5 = vpop.eup %2523 }
 0x2d2   : > { %v2526_v6 = vpop.eup %2525 }
 0x2d4   : > { %v2528_v7 = vpop.eup %2527 }
 0x2d5   : > { %v2530_v9 = vpop.eup %2529  ;;  %1003 = vmatprep.subr.mxu0 %v2528_v7 }
 0x2d6   : > { %v2532_v10 = vpop.eup %2531  ;;  %1080 = vmatprep.subr.mxu1 %v2530_v9  ;;  %1004 = vmatpush1.msra.mxu0 %v2526_v6  ;;  %v697_v6 = vrot.slane %v696_v52, 1 }
 0x2d7   : > { %v2534_v11 = vpop.eup %2533  ;;  %1081 = vmatpush1.msra.mxu1 %v2532_v10  ;;  %1005 = vmatprep.subr.mxu0 %v2524_v5  ;;  %v709_v10 = vrot.slane %v708_v46, 1 }
 0x2d8   : > { %v2536_v19 = vpop.eup %2535  ;;  %1082 = vmatprep.subr.mxu1 %v2534_v11  ;;  %1006 = vmatpush1.msra.mxu0 %v2522_v4 }
 0x2d9   : > { %v2538_v21 = vpop.eup %2537  ;;  %1083 = vmatpush1.msra.mxu1 %v2536_v19  ;;  %1007 = vmatprep.subr.mxu0 %v2520_v3  ;;  %v714_v3 = vadd.f32 %v713_v57, %v712_v45 }
 0x2da   : > { %v2540_v22 = vpop.eup %2539  ;;  %1084 = vmatprep.subr.mxu1 %v2538_v21  ;;  %1008 = vmatpush1.msra.mxu0 %v2518_v2 }
 0x2db   : > { %v2542_v24 = vpop.eup %2541  ;;  %1085 = vmatpush1.msra.mxu1 %v2540_v22  ;;  %1009 = vmatprep.subr.mxu0 %v2516_v1 }
 0x2dc   : > { %v2544_v25 = vpop.eup %2543  ;;  %1086 = vmatprep.subr.mxu1 %v2542_v24  ;;  %1010 = vmatpush1.msra.mxu0 %v2514_v0  ;;  %v702_v0 = vadd.f32 %v701_v53, %v700_v43  ;;  %v715_v24 = vrot.slane %v714_v3, 1 }
 0x2dd   : > { %1087 = vmatpush1.msra.mxu1 %v2544_v25  ;;  %2371 = vmatmul.mubr.msk.f32.vlgmr.msra.gmra.mxu0 %vm512_vm1, %v2367_v23 }
 0x2de   : > { %2373 = vmatmul.mubr.msk.f32.vlgmr.msra.gmra.mxu1 %vm512_vm1, %v2367_v23  ;;  %1049 = vmatprep.mubr.f32.mxu0 %v2681_v8  ;;  %v703_v21 = vrot.slane %v702_v0, 1  ;;  %v716_v38 = vadd.f32 %v715_v24, %v714_v3 }
 0x2df   : > { %1126 = vmatprep.mubr.f32.mxu1 %v2681_v8 }
 0x2e1   : > { %2372 = vmatmul.mubr.msk.f32.gmra.mxu0 %vm512_vm1, %v2368_v26 }
 0x2e2   : > { %2374 = vmatmul.mubr.msk.f32.gmra.mxu1 %vm512_vm1, %v2368_v26  ;;  %1287 = vmatprep.mubr.f32.mxu0 %v2681_v8 }
 0x2e3   : > { %1376 = vmatprep.mubr.f32.mxu1 %v2681_v8 }
 0x39d   : > { %v1045_v28 = vpop.f32.mrf.mxu0 }
 0x39e   : > { %v1046_v29 = vadd.f32 %v1045_v28, %v966_v27  ;;  %v1122_v30 = vpop.f32.mrf.mxu1 }
 0x39f   : > { %v1123_v31 = vadd.f32 %v1122_v30, %v966_v27  ;;  %v1047_v32 = vpop.f32.mrf.mxu0  ;;  %v710_v30 = vadd.f32 %v709_v10, %v708_v46 }
 0x3a0   : > { %2545 = vtanh.f32 %v1046_v29  ;;  %v1048_v33 = vadd.f32 %v1047_v32, %v966_v27  ;;  %v1124_v34 = vpop.f32.mrf.mxu1 }
 0x3a1   : > { %2547 = vtanh.f32 %v1123_v31  ;;  %v1125_v35 = vadd.f32 %v1124_v34, %v966_v27  ;;  %v698_v27 = vadd.f32 %v697_v6, %v696_v52  ;;  %v704_v34 = vadd.f32 %v703_v21, %v702_v0  ;;  %v971_v52 = vpop.permute.xlu1 %970  ;;  %v1209_v0 = vpop.permute.xlu0 %1208 }
 0x3a2   : > { %2549 = vtanh.f32 %v1048_v33  ;;  %v1051_v33 = vpop.f32.mrf.mxu0  ;;  %v1128_v37 = vpop.f32.mrf.mxu1 }
 0x3a3   : > { %2551 = vtanh.f32 %v1125_v35  ;;  %v1052_v57 = vadd.f32 %v1051_v33, %v971_v52 }
 0x3a4   : > { %v1053_v44 = vpop.f32.mrf.mxu0 }
 0x3a5   : > { %v1199_v10 = vpop.permute.xlu0 %1198 }
 0x3ad   : > { %v2546_v48 = vpop.eup %2545 }
 0x3ae   : > { %v2548_v50 = vpop.eup %2547  ;;  %v1153_v54 = vrot.slane %v2546_v48, 4  ;;  %v1137_v55 = vmul.f32 1.442695, %v2546_v48 }
 0x3af   : > { %v2550_v56 = vpop.eup %2549  ;;  %v1165_v58 = vrot.slane %v2548_v50, 4  ;;  %v1141_v59 = vmul.f32 1.442695, %v2548_v50 }
 0x3b0   : > { %v2552_v47 = vpop.eup %2551  ;;  %v1154_v60 = vadd.f32 %v2546_v48, %v1153_v54  ;;  %v1159_v61 = vrot.slane %v2550_v56, 4  ;;  %2553 = vpow2.f32 %v1137_v55  ;;  %v1139_v62 = vmul.f32 1.442695, %v2550_v56  ;;  %v1130_v48 = vpop.f32.mrf.mxu1 }
 0x3b1   : > { %v1166_v49 = vadd.f32 %v2548_v50, %v1165_v58  ;;  %v1171_v63 = vrot.slane %v2552_v47, 4  ;;  %2555 = vpow2.f32 %v1141_v59  ;;  %v1143_v51 = vmul.f32 1.442695, %v2552_v47 }
 0x3b2   : > { %v1155_v1 = vrot.slane %v1154_v60, 2  ;;  %v1160_v2 = vadd.f32 %v2550_v56, %v1159_v61  ;;  %2557 = vpow2.f32 %v1139_v62  ;;  %v1054_v56 = vadd.f32 %v1053_v44, %v971_v52 }
 0x3b3   : > { %v1167_v4 = vrot.slane %v1166_v49, 2  ;;  %v1172_v5 = vadd.f32 %v2552_v47, %v1171_v63  ;;  %2559 = vpow2.f32 %v1143_v51  ;;  %v1131_v58 = vadd.f32 %v1130_v48, %v971_v52  ;;  %v1204_v63 = vpop.permute.xlu1 %1203 }
 0x3b4   : > { %v1156_v7 = vadd.f32 %v1155_v1, %v1154_v60  ;;  %v1161_v9 = vrot.slane %v1160_v2, 2  ;;  %v1129_v47 = vadd.f32 %v1128_v37, %v971_v52 }
 0x3b5   : > { %v1168_v11 = vadd.f32 %v1167_v4, %v1166_v49  ;;  %v1173_v19 = vrot.slane %v1172_v5, 2 }
 0x3b6   : > { %v1157_v22 = vrot.slane %v1156_v7, 1  ;;  %v1162_v23 = vadd.f32 %v1161_v9, %v1160_v2 }
 0x3b7   : > { %v1169_v25 = vrot.slane %v1168_v11, 1  ;;  %v1174_v26 = vadd.f32 %v1173_v19, %v1172_v5  ;;  %v1194_v5 = vpop.permute.xlu1 %1193 }
 0x3b8   : > { %v1158_v28 = vadd.f32 %v1157_v22, %v1156_v7  ;;  %v1163_v29 = vrot.slane %v1162_v23, 1 }
 0x3b9   : > { %v1170_v31 = vadd.f32 %v1169_v25, %v1168_v11  ;;  %v1175_v32 = vrot.slane %v1174_v26, 1 }
 0x3ba   : > { %v2979_v35 = vadd.f32 %v1158_v28, %v698_v27  ;;  %v1164_v36 = vadd.f32 %v1163_v29, %v1162_v23 }
 0x3bb   : > { %v2981_v39 = vadd.f32 %v1170_v31, %v710_v30  ;;  %v1176_v40 = vadd.f32 %v1175_v32, %v1174_v26 }
 0x3bc   : > { %v2983_v41 = vadd.f32 %v1164_v36, %v704_v34 }
 0x3bd   : > { %v2554_v42 = vpop.eup %2553  ;;  %v2985_v43 = vadd.f32 %v1176_v40, %v716_v38 }
 0x3be   : > { %v2556_v45 = vpop.eup %2555  ;;  %v1145_v53 = vmul.f32 %v2554_v42, %v2777_v15  ;;  %v2375_v15 = vld [vmem:[%s3189_s1 + $0x40] sm:$0xff] }
 0x3bf   : > { %v2558_v50 = vpop.eup %2557  ;;  %v1147_v55 = vmul.f32 %v2556_v45, %v2792_v16  ;;  %v2378_v16 = vld [vmem:[%s3189_s1 + $0x58] sm:$0xff] }
 0x3c0   : > { %v2560_v54 = vpop.eup %2559  ;;  %v1146_v46 = vmul.f32 %v2558_v50, %v2771_v13  ;;  %v2993_v61 = vadd.f32 %v1145_v53, %v1052_v57  ;;  %v2376_v13 = vld [vmem:[%s3189_s1 + $0x48] sm:$0xff] }
 0x3c1   : > { %v1148_v59 = vmul.f32 %v2560_v54, %v2774_v14  ;;  %v3000_v49 = vadd.f32 %v1147_v55, %v1129_v47  ;;  %v2377_v14 = vld [vmem:[%s3189_s1 + $0x50] sm:$0xff] }
 0x3c2   : > { %v2991_v60 = vadd.f32 %v1146_v46, %v1054_v56 }
 0x3c3   : > { %v2995_v62 = vadd.f32 %v1148_v59, %v1131_v58 }
 0x3c4   : > { %1253 = vmatprep.subr.mxu0 %v2991_v60 }
 0x3c5   : > { %1342 = vmatprep.subr.mxu1 %v2995_v62  ;;  %1254 = vmatpush1.msra.mxu0 %v2993_v61 }
 0x3c6   : > { %1343 = vmatpush1.msra.mxu1 %v3000_v49  ;;  %2383 = vmatmul.mubr.msk.f32.vlgmr.msra.gmra.mxu0 %vm291_vm0, %v2375_v15 }
 0x3c7   : > { %2387 = vmatmul.mubr.msk.f32.vlgmr.msra.gmra.mxu1 %vm291_vm0, %v2375_v15  ;;  %1293 = vmatprep.mubr.f32.mxu0 %v2681_v8 }
 0x3c8   : > { %1382 = vmatprep.mubr.f32.mxu1 %v2681_v8 }
 0x3ca   : > { %2384 = vmatmul.mubr.msk.f32.gmra.mxu0 %vm291_vm0, %v2376_v13 }
 0x3cb   : > { %2388 = vmatmul.mubr.msk.f32.gmra.mxu1 %vm291_vm0, %v2376_v13  ;;  %1299 = vmatprep.mubr.f32.mxu0 %v2681_v8 }
 0x3cc   : > { %1388 = vmatprep.mubr.f32.mxu1 %v2681_v8 }
 0x3ce   : > { %2385 = vmatmul.mubr.msk.f32.gmra.mxu0 %vm291_vm0, %v2377_v14 }
 0x3cf   : > { %2389 = vmatmul.mubr.msk.f32.gmra.mxu1 %vm291_vm0, %v2377_v14  ;;  %1305 = vmatprep.mubr.f32.mxu0 %v2681_v8 }
 0x3d0   : > { %1394 = vmatprep.mubr.f32.mxu1 %v2681_v8 }
 0x3d2   : > { %2386 = vmatmul.mubr.msk.f32.gmra.mxu0 %vm291_vm0, %v2378_v16 }
 0x3d3   : > { %2390 = vmatmul.mubr.msk.f32.gmra.mxu1 %vm291_vm0, %v2378_v16  ;;  %1503 = vmatprep.mubr.f32.mxu0 %v2681_v8  ;;  %v2391_v16 = vld [vmem:[%s3191_s3 + $0x20] sm:$0xff] }
 0x3d4   : > { %1580 = vmatprep.mubr.f32.mxu1 %v2681_v8 }
 0x486   : > { %v1289_v51 = vpop.f32.mrf.mxu0 }
 0x487   : > { %v1378_v1 = vpop.f32.mrf.mxu1  ;;  %v1290_v7 = vadd.f32 %v1289_v51, %v1194_v5 }
 0x488   : > { %v1291_v2 = vpop.f32.mrf.mxu0  ;;  %v1379_v48 = vadd.f32 %v1378_v1, %v1194_v5  ;;  %v1426_v1 = vpop.permute.xlu0 %1425 }
 0x489   : > { %v1380_v3 = vpop.f32.mrf.mxu1  ;;  %v1292_v11 = vadd.f32 %v1291_v2, %v1194_v5  ;;  %2561 = vtanh.f32 %v1290_v7 }
 0x48a   : > { %v1295_v4 = vpop.f32.mrf.mxu0  ;;  %v1381_v45 = vadd.f32 %v1380_v3, %v1194_v5 }
 0x48b   : > { %v1384_v6 = vpop.f32.mrf.mxu1  ;;  %v1296_v21 = vadd.f32 %v1295_v4, %v1199_v10  ;;  %2563 = vtanh.f32 %v1292_v11 }
 0x48c   : > { %v1297_v9 = vpop.f32.mrf.mxu0  ;;  %v1385_v44 = vadd.f32 %v1384_v6, %v1199_v10 }
 0x48d   : > { %v1386_v19 = vpop.f32.mrf.mxu1  ;;  %v1298_v23 = vadd.f32 %v1297_v9, %v1199_v10  ;;  %2565 = vtanh.f32 %v1296_v21 }
 0x48e   : > { %v1301_v22 = vpop.f32.mrf.mxu0  ;;  %v1387_v42 = vadd.f32 %v1386_v19, %v1199_v10 }
 0x48f   : > { %v1390_v24 = vpop.f32.mrf.mxu1  ;;  %v1302_v25 = vadd.f32 %v1301_v22, %v1204_v63  ;;  %2567 = vtanh.f32 %v1298_v23 }
 0x490   : > { %v1303_v26 = vpop.f32.mrf.mxu0  ;;  %v1391_v40 = vadd.f32 %v1390_v24, %v1204_v63 }
 0x491   : > { %v1304_v27 = vadd.f32 %v1303_v26, %v1204_v63  ;;  %v1392_v28 = vpop.f32.mrf.mxu1  ;;  %2569 = vtanh.f32 %v1302_v25 }
 0x492   : > { %v1307_v29 = vpop.f32.mrf.mxu0  ;;  %v1393_v37 = vadd.f32 %v1392_v28, %v1204_v63 }
 0x493   : > { %v1308_v30 = vadd.f32 %v1307_v29, %v1209_v0  ;;  %v1396_v31 = vpop.f32.mrf.mxu1  ;;  %2571 = vtanh.f32 %v1304_v27 }
 0x494   : > { %v1309_v32 = vpop.f32.mrf.mxu0  ;;  %v1397_v33 = vadd.f32 %v1396_v31, %v1209_v0 }
 0x495   : > { %v1310_v34 = vadd.f32 %v1309_v32, %v1209_v0  ;;  %v1398_v36 = vpop.f32.mrf.mxu1  ;;  %2573 = vtanh.f32 %v1308_v30 }
 0x496   : > { %v1399_v38 = vadd.f32 %v1398_v36, %v1209_v0  ;;  %v2562_v50 = vpop.eup %2561  ;;  %v2392_v0 = vld [vmem:[%s3191_s3 + $0x28] sm:$0xff] }
 0x497   : > { %2575 = vtanh.f32 %v1310_v34 }
 0x498   : > { %2577 = vtanh.f32 %v1399_v38  ;;  %v2564_v52 = vpop.eup %2563 }
 0x499   : > { %2579 = vtanh.f32 %v1397_v33 }
 0x49a   : > { %2581 = vtanh.f32 %v1393_v37  ;;  %v2566_v53 = vpop.eup %2565 }
 0x49b   : > { %2583 = vtanh.f32 %v1391_v40 }
 0x49c   : > { %2585 = vtanh.f32 %v1387_v42  ;;  %v2568_v54 = vpop.eup %2567 }
 0x49d   : > { %2587 = vtanh.f32 %v1385_v44 }
 0x49e   : > { %2589 = vtanh.f32 %v1381_v45  ;;  %v2570_v55 = vpop.eup %2569 }
 0x49f   : > { %2591 = vtanh.f32 %v1379_v48 }
 0x4a0   : > { %v2572_v56 = vpop.eup %2571 }
 0x4a2   : > { %v2574_v46 = vpop.eup %2573 }
 0x4a4   : > { %v2576_v57 = vpop.eup %2575 }
 0x4a5   : > { %v2578_v58 = vpop.eup %2577  ;;  %1463 = vmatprep.subr.mxu0 %v2576_v57 }
 0x4a6   : > { %v2580_v59 = vpop.eup %2579  ;;  %1540 = vmatprep.subr.mxu1 %v2578_v58  ;;  %1464 = vmatpush1.msra.mxu0 %v2574_v46 }
 0x4a7   : > { %v2582_v47 = vpop.eup %2581  ;;  %1541 = vmatpush1.msra.mxu1 %v2580_v59  ;;  %1465 = vmatprep.subr.mxu0 %v2572_v56 }
 0x4a8   : > { %v2584_v15 = vpop.eup %2583  ;;  %1542 = vmatprep.subr.mxu1 %v2582_v47  ;;  %1466 = vmatpush1.msra.mxu0 %v2570_v55 }
 0x4a9   : > { %v2586_v13 = vpop.eup %2585  ;;  %1543 = vmatpush1.msra.mxu1 %v2584_v15  ;;  %1467 = vmatprep.subr.mxu0 %v2568_v54 }
 0x4aa   : > { %v2588_v14 = vpop.eup %2587  ;;  %1544 = vmatprep.subr.mxu1 %v2586_v13  ;;  %1468 = vmatpush1.msra.mxu0 %v2566_v53 }
 0x4ab   : > { %v2590_v63 = vpop.eup %2589  ;;  %1545 = vmatpush1.msra.mxu1 %v2588_v14  ;;  %1469 = vmatprep.subr.mxu0 %v2564_v52 }
 0x4ac   : > { %v2592_v51 = vpop.eup %2591  ;;  %1546 = vmatprep.subr.mxu1 %v2590_v63  ;;  %1470 = vmatpush1.msra.mxu0 %v2562_v50 }
 0x4ad   : > { %1547 = vmatpush1.msra.mxu1 %v2592_v51  ;;  %2395 = vmatmul.mubr.msk.f32.vlgmr.msra.gmra.mxu0 %vm512_vm1, %v2391_v16 }
 0x4ae   : > { %2397 = vmatmul.mubr.msk.f32.vlgmr.msra.gmra.mxu1 %vm512_vm1, %v2391_v16  ;;  %1509 = vmatprep.mubr.f32.mxu0 %v2681_v8  ;;  %v1431_v16 = vpop.permute.xlu1 %1430 }
 0x4af   : > { %1586 = vmatprep.mubr.f32.mxu1 %v2681_v8 }
 0x4b1   : > { %2396 = vmatmul.mubr.msk.f32.gmra.mxu0 %vm512_vm1, %v2392_v0 }
 0x4b2   : > { %2398 = vmatmul.mubr.msk.f32.gmra.mxu1 %vm512_vm1, %v2392_v0  ;;  %1747 = vmatprep.mubr.f32.mxu0 %v2681_v8 }
 0x4b3   : > { %1836 = vmatprep.mubr.f32.mxu1 %v2681_v8 }
 0x56d   : > { %v1505_v2 = vpop.f32.mrf.mxu0 }
 0x56e   : > { %v1506_v3 = vadd.f32 %v1505_v2, %v1426_v1  ;;  %v1582_v4 = vpop.f32.mrf.mxu1 }
 0x56f   : > { %v1583_v5 = vadd.f32 %v1582_v4, %v1426_v1  ;;  %v1507_v6 = vpop.f32.mrf.mxu0 }
 0x570   : > { %2593 = vtanh.f32 %v1506_v3  ;;  %v1508_v7 = vadd.f32 %v1507_v6, %v1426_v1  ;;  %v1584_v9 = vpop.f32.mrf.mxu1 }
 0x571   : > { %2595 = vtanh.f32 %v1583_v5  ;;  %v1585_v10 = vadd.f32 %v1584_v9, %v1426_v1  ;;  %v1511_v46 = vpop.f32.mrf.mxu0 }
 0x572   : > { %2597 = vtanh.f32 %v1508_v7  ;;  %v1588_v59 = vpop.f32.mrf.mxu1 }
 0x573   : > { %2599 = vtanh.f32 %v1585_v10  ;;  %v1513_v51 = vpop.f32.mrf.mxu0  ;;  %v1589_v3 = vadd.f32 %v1588_v59, %v1431_v16 }
 0x574   : > { %v1590_v2 = vpop.f32.mrf.mxu1  ;;  %v1514_v6 = vadd.f32 %v1513_v51, %v1431_v16 }
 0x575   : > { %v1591_v9 = vadd.f32 %v1590_v2, %v1431_v16 }
 0x57d   : > { %v2594_v11 = vpop.eup %2593 }
 0x57e   : > { %v2596_v19 = vpop.eup %2595  ;;  %v1613_v21 = vrot.slane %v2594_v11, 4  ;;  %v1597_v22 = vmul.f32 1.442695, %v2594_v11 }
 0x57f   : > { %v2598_v23 = vpop.eup %2597  ;;  %v1625_v24 = vrot.slane %v2596_v19, 4  ;;  %v1601_v25 = vmul.f32 1.442695, %v2596_v19 }
 0x580   : > { %v2600_v26 = vpop.eup %2599  ;;  %v1614_v27 = vadd.f32 %v2594_v11, %v1613_v21  ;;  %v1619_v28 = vrot.slane %v2598_v23, 4  ;;  %2601 = vpow2.f32 %v1597_v22  ;;  %v1599_v29 = vmul.f32 1.442695, %v2598_v23  ;;  %v1664_v21 = vpop.permute.xlu1 %1663 }
 0x581   : > { %v1626_v30 = vadd.f32 %v2596_v19, %v1625_v24  ;;  %v1631_v31 = vrot.slane %v2600_v26, 4  ;;  %2603 = vpow2.f32 %v1601_v25  ;;  %v1603_v32 = vmul.f32 1.442695, %v2600_v26  ;;  %v2402_v19 = vld [vmem:[%s3189_s1 + $0x78] sm:$0xff] }
 0x582   : > { %v1615_v33 = vrot.slane %v1614_v27, 2  ;;  %v1620_v34 = vadd.f32 %v2598_v23, %v1619_v28  ;;  %2605 = vpow2.f32 %v1599_v29  ;;  %v1669_v23 = vpop.permute.xlu0 %1668 }
 0x583   : > { %v1627_v36 = vrot.slane %v1626_v30, 2  ;;  %v1632_v37 = vadd.f32 %v2600_v26, %v1631_v31  ;;  %2607 = vpow2.f32 %v1603_v32 }
 0x584   : > { %v1616_v38 = vadd.f32 %v1615_v33, %v1614_v27  ;;  %v1621_v40 = vrot.slane %v1620_v34, 2  ;;  %v1654_v28 = vpop.permute.xlu1 %1653 }
 0x585   : > { %v1628_v42 = vadd.f32 %v1627_v36, %v1626_v30  ;;  %v1633_v44 = vrot.slane %v1632_v37, 2 }
 0x586   : > { %v1617_v45 = vrot.slane %v1616_v38, 1  ;;  %v1622_v48 = vadd.f32 %v1621_v40, %v1620_v34  ;;  %v1659_v32 = vpop.permute.xlu0 %1658 }
 0x587   : > { %v1629_v50 = vrot.slane %v1628_v42, 1  ;;  %v1634_v52 = vadd.f32 %v1633_v44, %v1632_v37 }
 0x588   : > { %v1618_v53 = vadd.f32 %v1617_v45, %v1616_v38  ;;  %v1623_v54 = vrot.slane %v1622_v48, 1 }
 0x589   : > { %v1630_v55 = vadd.f32 %v1629_v50, %v1628_v42  ;;  %v1635_v56 = vrot.slane %v1634_v52, 1 }
 0x58a   : > { %v3046_v57 = vadd.f32 %v1618_v53, %v2979_v35  ;;  %v1624_v58 = vadd.f32 %v1623_v54, %v1622_v48  ;;  %v1512_v35 = vadd.f32 %v1511_v46, %v1431_v16 }
 0x58b   : > { %v3049_v47 = vadd.f32 %v1630_v55, %v2981_v39  ;;  %v1636_v15 = vadd.f32 %v1635_v56, %v1634_v52 }
 0x58c   : > { %v3052_v13 = vadd.f32 %v1624_v58, %v2983_v41 }
 0x58d   : > { %v2602_v14 = vpop.eup %2601  ;;  %v3055_v63 = vadd.f32 %v1636_v15, %v2985_v43 }
 0x58e   : > { %v2604_v0 = vpop.eup %2603  ;;  %v1605_v1 = vmul.f32 %v2602_v14, %v2919_v17 }
 0x58f   : > { %v2606_v39 = vpop.eup %2605  ;;  %v1607_v41 = vmul.f32 %v2604_v0, %v2926_v20  ;;  %v2399_v20 = vld [vmem:[%s3189_s1 + $0x60] sm:$0xff] }
 0x590   : > { %v2608_v4 = vpop.eup %2607  ;;  %v3059_v5 = vadd.f32 %v1605_v1, %v1512_v35  ;;  %v1606_v43 = vmul.f32 %v2606_v39, %v2917_v12  ;;  %v2400_v12 = vld [vmem:[%s3189_s1 + $0x68] sm:$0xff] }
 0x591   : > { %v3062_v7 = vadd.f32 %v1607_v41, %v1589_v3  ;;  %v1608_v10 = vmul.f32 %v2608_v4, %v2921_v18  ;;  %v2401_v18 = vld [vmem:[%s3189_s1 + $0x70] sm:$0xff] }
 0x592   : > { %2105 = vst [vmem:[%s2780_s23 + $0x20] sm:$0xff] %v3059_v5  ;;  %v3067_v17 = vadd.f32 %v1606_v43, %v1514_v6 }
 0x593   : > { %2107 = vst [vmem:[%s2780_s23 + $0x30] sm:$0xff] %v3062_v7  ;;  %v3071_v11 = vadd.f32 %v1608_v10, %v1591_v9 }
 0x594   : > { %2106 = vst [vmem:[%s2780_s23 + $0x28] sm:$0xff] %v3067_v17  ;;  %1713 = vmatprep.subr.mxu0 %v3067_v17 }
 0x595   : > { %2108 = vst [vmem:[%s2780_s23 + $0x38] sm:$0xff] %v3071_v11  ;;  %1802 = vmatprep.subr.mxu1 %v3071_v11  ;;  %1714 = vmatpush1.msra.mxu0 %v3059_v5 }
 0x596   : > { %1803 = vmatpush1.msra.mxu1 %v3062_v7  ;;  %2407 = vmatmul.mubr.msk.f32.vlgmr.msra.gmra.mxu0 %vm291_vm0, %v2399_v20 }
 0x597   : > { %2411 = vmatmul.mubr.msk.f32.vlgmr.msra.gmra.mxu1 %vm291_vm0, %v2399_v20  ;;  %1753 = vmatprep.mubr.f32.mxu0 %v2681_v8 }
 0x598   : > { %1842 = vmatprep.mubr.f32.mxu1 %v2681_v8 }
 0x59a   : > { %2408 = vmatmul.mubr.msk.f32.gmra.mxu0 %vm291_vm0, %v2400_v12 }
 0x59b   : > { %2412 = vmatmul.mubr.msk.f32.gmra.mxu1 %vm291_vm0, %v2400_v12  ;;  %1759 = vmatprep.mubr.f32.mxu0 %v2681_v8 }
 0x59c   : > { %1848 = vmatprep.mubr.f32.mxu1 %v2681_v8 }
 0x59e   : > { %2409 = vmatmul.mubr.msk.f32.gmra.mxu0 %vm291_vm0, %v2401_v18 }
 0x59f   : > { %2413 = vmatmul.mubr.msk.f32.gmra.mxu1 %vm291_vm0, %v2401_v18  ;;  %1765 = vmatprep.mubr.f32.mxu0 %v2681_v8 }
 0x5a0   : > { %1854 = vmatprep.mubr.f32.mxu1 %v2681_v8 }
 0x5a2   : > { %2410 = vmatmul.mubr.msk.f32.gmra.mxu0 %vm291_vm0, %v2402_v19 }
 0x5a3   : > { %2414 = vmatmul.mubr.msk.f32.gmra.mxu1 %vm291_vm0, %v2402_v19  ;;  %1963 = vmatprep.mubr.f32.mxu0 %v2681_v8  ;;  %v2415_v19 = vld [vmem:[%s3191_s3 + $0x30] sm:$0xff] }
 0x5a4   : > { %2040 = vmatprep.mubr.f32.mxu1 %v2681_v8 }
 0x656   : > { %v1749_v22 = vpop.f32.mrf.mxu0 }
 0x657   : > { %v1838_v24 = vpop.f32.mrf.mxu1  ;;  %v1750_v30 = vadd.f32 %v1749_v22, %v1654_v28 }
 0x658   : > { %v1751_v25 = vpop.f32.mrf.mxu0  ;;  %v1839_v0 = vadd.f32 %v1838_v24, %v1654_v28  ;;  %v1886_v24 = vpop.permute.xlu0 %1885 }
 0x659   : > { %v1840_v26 = vpop.f32.mrf.mxu1  ;;  %v1752_v33 = vadd.f32 %v1751_v25, %v1654_v28  ;;  %2609 = vtanh.f32 %v1750_v30 }
 0x65a   : > { %v1755_v27 = vpop.f32.mrf.mxu0  ;;  %v1841_v51 = vadd.f32 %v1840_v26, %v1654_v28 }
 0x65b   : > { %v1844_v29 = vpop.f32.mrf.mxu1  ;;  %v1756_v36 = vadd.f32 %v1755_v27, %v1659_v32  ;;  %2611 = vtanh.f32 %v1752_v33 }
 0x65c   : > { %v1757_v31 = vpop.f32.mrf.mxu0  ;;  %v1845_v16 = vadd.f32 %v1844_v29, %v1659_v32 }
 0x65d   : > { %v1846_v34 = vpop.f32.mrf.mxu1  ;;  %v1758_v38 = vadd.f32 %v1757_v31, %v1659_v32  ;;  %2613 = vtanh.f32 %v1756_v36 }
 0x65e   : > { %v1761_v37 = vpop.f32.mrf.mxu0  ;;  %v1847_v14 = vadd.f32 %v1846_v34, %v1659_v32 }
 0x65f   : > { %v1850_v40 = vpop.f32.mrf.mxu1  ;;  %v1762_v42 = vadd.f32 %v1761_v37, %v1664_v21  ;;  %2615 = vtanh.f32 %v1758_v38 }
 0x660   : > { %v1763_v44 = vpop.f32.mrf.mxu0  ;;  %v1851_v15 = vadd.f32 %v1850_v40, %v1664_v21 }
 0x661   : > { %v1764_v45 = vadd.f32 %v1763_v44, %v1664_v21  ;;  %v1852_v48 = vpop.f32.mrf.mxu1  ;;  %2617 = vtanh.f32 %v1762_v42 }
 0x662   : > { %v1767_v50 = vpop.f32.mrf.mxu0  ;;  %v1853_v58 = vadd.f32 %v1852_v48, %v1664_v21 }
 0x663   : > { %v1768_v52 = vadd.f32 %v1767_v50, %v1669_v23  ;;  %v1856_v53 = vpop.f32.mrf.mxu1  ;;  %2619 = vtanh.f32 %v1764_v45 }
 0x664   : > { %v1769_v54 = vpop.f32.mrf.mxu0  ;;  %v1857_v55 = vadd.f32 %v1856_v53, %v1669_v23 }
 0x665   : > { %v1770_v56 = vadd.f32 %v1769_v54, %v1669_v23  ;;  %v1858_v46 = vpop.f32.mrf.mxu1  ;;  %2621 = vtanh.f32 %v1768_v52 }
 0x666   : > { %v1859_v59 = vadd.f32 %v1858_v46, %v1669_v23  ;;  %v2610_v35 = vpop.eup %2609  ;;  %v2416_v23 = vld [vmem:[%s3191_s3 + $0x38] sm:$0xff] }
 0x667   : > { %2623 = vtanh.f32 %v1770_v56 }
 0x668   : > { %2625 = vtanh.f32 %v1859_v59  ;;  %v2612_v1 = vpop.eup %2611 }
 0x669   : > { %2627 = vtanh.f32 %v1857_v55 }
 0x66a   : > { %2629 = vtanh.f32 %v1853_v58  ;;  %v2614_v2 = vpop.eup %2613 }
 0x66b   : > { %2631 = vtanh.f32 %v1851_v15  ;;  %v2683_v15 = vmov 1966171168  }
 0x66c   : > { %2633 = vtanh.f32 %v1847_v14  ;;  %v2616_v39 = vpop.eup %2615  ;;  %v2160_v14 = vunpack.c.l.s4 %v2683_v15 }
 0x66d   : > { %2635 = vtanh.f32 %v1845_v16  ;;  %v2162_v16 = vlaneseq }
 0x66e   : > { %2637 = vtanh.f32 %v1841_v51  ;;  %v2618_v3 = vpop.eup %2617 }
 0x66f   : > { %2639 = vtanh.f32 %v1839_v0  ;;  %vm3142_vm2 = vcmp.lt.s32.totalorder %v2162_v16, 512 }
 0x670   : > { %v2620_v41 = vpop.eup %2619 }
 0x672   : > { %v2622_v4 = vpop.eup %2621 }
 0x674   : > { %v2624_v6 = vpop.eup %2623 }
 0x675   : > { %v2626_v43 = vpop.eup %2625  ;;  %1923 = vmatprep.subr.mxu0 %v2624_v6  ;;  %v2163_v6 = vshrl.u32 %v2162_v16, 7 }
 0x676   : > { %v2628_v9 = vpop.eup %2627  ;;  %2000 = vmatprep.subr.mxu1 %v2626_v43  ;;  %1924 = vmatpush1.msra.mxu0 %v2622_v4  ;;  %v2161_v4 = vunpack.c.0.s8 %v2160_v14 }
 0x677   : > { %v2630_v10 = vpop.eup %2629  ;;  %2001 = vmatpush1.msra.mxu1 %v2628_v9  ;;  %1925 = vmatprep.subr.mxu0 %v2620_v41 }
 0x678   : > { %v2632_v20 = vpop.eup %2631  ;;  %2002 = vmatprep.subr.mxu1 %v2630_v10  ;;  %1926 = vmatpush1.msra.mxu0 %v2618_v3 }
 0x679   : > { %v2634_v12 = vpop.eup %2633  ;;  %2003 = vmatpush1.msra.mxu1 %v2632_v20  ;;  %1927 = vmatprep.subr.mxu0 %v2616_v39 }
 0x67a   : > { %v2636_v18 = vpop.eup %2635  ;;  %2004 = vmatprep.subr.mxu1 %v2634_v12  ;;  %1928 = vmatpush1.msra.mxu0 %v2614_v2 }
 0x67b   : > { %v2638_v21 = vpop.eup %2637  ;;  %2005 = vmatpush1.msra.mxu1 %v2636_v18  ;;  %1929 = vmatprep.subr.mxu0 %v2612_v1 }
 0x67c   : > { %v2640_v22 = vpop.eup %2639  ;;  %2006 = vmatprep.subr.mxu1 %v2638_v21  ;;  %1930 = vmatpush1.msra.mxu0 %v2610_v35 }
 0x67d   : > { %2007 = vmatpush1.msra.mxu1 %v2640_v22  ;;  %2419 = vmatmul.mubr.msk.f32.vlgmr.msra.gmra.mxu0 %vm512_vm1, %v2415_v19  ;;  %v3123_v22 = vsub.s32 %v2161_v4, %v2163_v6 }
 0x67e   : > { %2421 = vmatmul.mubr.msk.f32.vlgmr.msra.gmra.mxu1 %vm512_vm1, %v2415_v19  ;;  %1969 = vmatprep.mubr.f32.mxu0 %v2681_v8 }
 0x67f   : > { %2046 = vmatprep.mubr.f32.mxu1 %v2681_v8 }
 0x681   : > { %2420 = vmatmul.mubr.msk.f32.gmra.mxu0 %vm512_vm1, %v2416_v23 }
 0x682   : > { %2422 = vmatmul.mubr.msk.f32.gmra.mxu1 %vm512_vm1, %v2416_v23 }
 0x73d   : > { %v1965_v25 = vpop.f32.mrf.mxu0 }
 0x73e   : > { %v1966_v26 = vadd.f32 %v1965_v25, %v1886_v24  ;;  %v2042_v27 = vpop.f32.mrf.mxu1 }
 0x73f   : > { %v2043_v28 = vadd.f32 %v2042_v27, %v1886_v24  ;;  %v1967_v29 = vpop.f32.mrf.mxu0 }
 0x740   : > { %2641 = vtanh.f32 %v1966_v26  ;;  %v1968_v30 = vadd.f32 %v1967_v29, %v1886_v24  ;;  %v2044_v31 = vpop.f32.mrf.mxu1 }
 0x741   : > { %2643 = vtanh.f32 %v2043_v28  ;;  %v2045_v32 = vadd.f32 %v2044_v31, %v1886_v24  ;;  %v1971_v10 = vpop.f32.mrf.mxu0  ;;  %v1891_v24 = vpop.permute.xlu1 %1890 }
 0x742   : > { %2645 = vtanh.f32 %v1968_v30  ;;  %v2048_v12 = vpop.f32.mrf.mxu1  ;;  %v1972_v30 = vadd.f32 %v1971_v10, %v1891_v24 }
 0x743   : > { %2647 = vtanh.f32 %v2045_v32  ;;  %v1973_v27 = vpop.f32.mrf.mxu0 }
 0x744   : > { %v2050_v32 = vpop.f32.mrf.mxu1 }
 0x74d   : > { %v2642_v33 = vpop.eup %2641 }
 0x74e   : > { %v2644_v34 = vpop.eup %2643  ;;  %v2073_v8 = vrot.slane %v2642_v33, 4  ;;  %v2057_v36 = vmul.f32 1.442695, %v2642_v33 }
 0x74f   : > { %v2646_v37 = vpop.eup %2645  ;;  %v2085_v38 = vrot.slane %v2644_v34, 4  ;;  %v2061_v40 = vmul.f32 1.442695, %v2644_v34 }
 0x750   : > { %v2648_v42 = vpop.eup %2647  ;;  %v2074_v44 = vadd.f32 %v2642_v33, %v2073_v8  ;;  %v2079_v45 = vrot.slane %v2646_v37, 4  ;;  %2649 = vpow2.f32 %v2057_v36  ;;  %v2059_v48 = vmul.f32 1.442695, %v2646_v37 }
 0x751   : > { %v2086_v50 = vadd.f32 %v2644_v34, %v2085_v38  ;;  %v2091_v52 = vrot.slane %v2648_v42, 4  ;;  %2651 = vpow2.f32 %v2061_v40  ;;  %v2063_v53 = vmul.f32 1.442695, %v2648_v42 }
 0x752   : > { %v2075_v54 = vrot.slane %v2074_v44, 2  ;;  %v2080_v55 = vadd.f32 %v2646_v37, %v2079_v45  ;;  %2653 = vpow2.f32 %v2059_v48  ;;  %v2049_v34 = vadd.f32 %v2048_v12, %v1891_v24 }
 0x753   : > { %v2087_v56 = vrot.slane %v2086_v50, 2  ;;  %v2092_v46 = vadd.f32 %v2648_v42, %v2091_v52  ;;  %2655 = vpow2.f32 %v2063_v53  ;;  %v1974_v37 = vadd.f32 %v1973_v27, %v1891_v24 }
 0x754   : > { %v2076_v58 = vadd.f32 %v2075_v54, %v2074_v44  ;;  %v2081_v59 = vrot.slane %v2080_v55, 2  ;;  %v2051_v40 = vadd.f32 %v2050_v32, %v1891_v24  ;;  %v2113_v44 = vmul.f32 %v3059_v5, %v3059_v5 }
 0x755   : > { %v2088_v51 = vadd.f32 %v2087_v56, %v2086_v50  ;;  %v2093_v0 = vrot.slane %v2092_v46, 2  ;;  %v2115_v48 = vmul.f32 %v3062_v7, %v3062_v7 }
 0x756   : > { %v2077_v35 = vrot.slane %v2076_v58, 1  ;;  %v2082_v1 = vadd.f32 %v2081_v59, %v2080_v55  ;;  %v2116_v55 = vmul.f32 %v3071_v11, %v3071_v11 }
 0x757   : > { %v2089_v2 = vrot.slane %v2088_v51, 1  ;;  %v2094_v39 = vadd.f32 %v2093_v0, %v2092_v46 }
 0x758   : > { %v2078_v3 = vadd.f32 %v2077_v35, %v2076_v58  ;;  %v2083_v41 = vrot.slane %v2082_v1, 1 }
 0x759   : > { %v2090_v43 = vadd.f32 %v2089_v2, %v2088_v51  ;;  %v2095_v9 = vrot.slane %v2094_v39, 1 }
 0x75a   : > { %v2084_v20 = vadd.f32 %v2083_v41, %v2082_v1  ;;  %v2097_v19 = vadd.f32 %v2078_v3, %v3046_v57 }
 0x75b   : > { %v2096_v18 = vadd.f32 %v2095_v9, %v2094_v39  ;;  %v2099_v25 = vadd.f32 %v2090_v43, %v3049_v47 }
 0x75c   : > { %v2098_v21 = vadd.f32 %v2084_v20, %v3052_v13 }
 0x75d   : > { %v2650_v23 = vpop.eup %2649  ;;  %v2100_v26 = vadd.f32 %v2096_v18, %v3055_v63 }
 0x75e   : > { %v2652_v28 = vpop.eup %2651  ;;  %v2193_v29 = vcombine.low %v2097_v19, %v2098_v21  ;;  %v2065_v31 = vmul.f32 %v2650_v23, %v2993_v61 }
 0x75f   : > { %v2654_v33 = vpop.eup %2653  ;;  %v2194_v57 = vcombine.low %v2099_v25, %v2100_v26  ;;  %v2067_v13 = vmul.f32 %v2652_v28, %v3000_v49 }
 0x760   : > { %v2656_v8 = vpop.eup %2655  ;;  %v2069_v36 = vadd.f32 %v2065_v31, %v1972_v30  ;;  %v2066_v47 = vmul.f32 %v2654_v33, %v2991_v60  ;;  %v2201_v63 = vrot.slane %v2193_v29, %v3123_v22 }
 0x761   : > { %v2071_v38 = vadd.f32 %v2067_v13, %v2049_v34  ;;  %v2068_v61 = vmul.f32 %v2656_v8, %v2995_v62  ;;  %v2208_v42 = vrot.slane %v2194_v57, %v3123_v22  ;;  %v2114_v62 = vmul.f32 %v3067_v17, %v3067_v17 }
 0x762   : > { %2101 = vst [vmem:[%s2780_s23] sm:$0xff] %v2069_v36  ;;  %v2109_v49 = vmul.f32 %v2069_v36, %v2069_v36  ;;  %v2070_v45 = vadd.f32 %v2066_v47, %v1974_v37 }
 0x763   : > { %2103 = vst [vmem:[%s2780_s23 + $0x10] sm:$0xff] %v2071_v38  ;;  %v2111_v60 = vmul.f32 %v2071_v38, %v2071_v38  ;;  %v2072_v50 = vadd.f32 %v2068_v61, %v2051_v40  ;;  %v2209_v52 = vcombine.low %v2201_v63, %v2208_v42  ;;  %v2255_v63 = vld [vmem:[%s2780_s23 + $0x20] sm:$0xff] (%p2744_p5)  ;;  %v2257_v38 = vld [vmem:[%s2780_s23 + $0x28] sm:$0xff] (%p2744_p5)  ;;  %v2259_v40 = vld [vmem:[%s2780_s23 + $0x30] sm:$0xff] (%p2744_p5) }
 0x764   : > { %v2117_v53 = vadd.f32 %v2113_v44, %v2109_v49  ;;  %2102 = vst [vmem:[%s2780_s23 + $0x8] sm:$0xff] %v2070_v45  ;;  %v2110_v54 = vmul.f32 %v2070_v45, %v2070_v45  ;;  %2256 = vst [vmem:[%s2234_s26 + $0x40] sm:$0xff] (%p2744_p5), %v2255_v63  ;;  %v2261_v61 = vld [vmem:[%s2780_s23 + $0x38] sm:$0xff] (%p2744_p5) }
 0x765   : > { %v2119_v56 = vadd.f32 %v2115_v48, %v2111_v60  ;;  %2104 = vst [vmem:[%s2780_s23 + $0x18] sm:$0xff] %v2072_v50  ;;  %v2112_v7 = vmul.f32 %v2072_v50, %v2072_v50  ;;  %v2216_v46 = vrot.slane %v2209_v52, %v3123_v22  ;;  %2258 = vst [vmem:[%s2234_s26 + $0x48] sm:$0xff] (%p2744_p5), %v2257_v38 }
 0x766   : > { %v2121_v58 = vrot.slane %v2117_v53, 4  ;;  %v2118_v59 = vadd.f32 %v2114_v62, %v2110_v54  ;;  %2260 = vst [vmem:[%s2234_s26 + $0x50] sm:$0xff] (%p2744_p5), %v2259_v40  ;;  %2262 = vst [vmem:[%s2234_s26 + $0x58] sm:$0xff] (%p2744_p5), %v2261_v61 }
 0x767   : > { %v2133_v15 = vrot.slane %v2119_v56, 4  ;;  %v2120_v14 = vadd.f32 %v2116_v55, %v2112_v7  ;;  %2428 = vst.msk [vmem:[%s2780_s23 + $0x41] ss:$8 sm:$0xf] %vm3142_vm2, %v2216_v46 }
 0x768   : > { %v2122_v17 = vadd.f32 %v2121_v58, %v2117_v53  ;;  %v2127_v16 = vrot.slane %v2118_v59, 4 }
 0x769   : > { %v2134_v51 = vadd.f32 %v2133_v15, %v2119_v56  ;;  %v2139_v0 = vrot.slane %v2120_v14, 4  ;;  %v2247_v36 = vld [vmem:[%s2780_s23] sm:$0xff] (%p2744_p5) }
 0x76a   : > { %v2123_v35 = vrot.slane %v2122_v17, 2  ;;  %v2128_v1 = vadd.f32 %v2127_v16, %v2118_v59  ;;  %v2251_v37 = vld [vmem:[%s2780_s23 + $0x10] sm:$0xff] (%p2744_p5)  ;;  %2248 = vst [vmem:[%s2234_s26] sm:$0xff] (%p2744_p5), %v2247_v36 }
 0x76b   : > { %v2135_v2 = vrot.slane %v2134_v51, 2  ;;  %v2140_v11 = vadd.f32 %v2139_v0, %v2120_v14  ;;  %2252 = vst [vmem:[%s2234_s26 + $0x10] sm:$0xff] (%p2744_p5), %v2251_v37 }
 0x76c   : > { %v2124_v39 = vadd.f32 %v2123_v35, %v2122_v17  ;;  %v2129_v3 = vrot.slane %v2128_v1, 2  ;;  %v2253_v47 = vld [vmem:[%s2780_s23 + $0x18] sm:$0xff] (%p2744_p5) }
 0x76d   : > { %v2136_v41 = vadd.f32 %v2135_v2, %v2134_v51  ;;  %v2141_v4 = vrot.slane %v2140_v11, 2  ;;  %2254 = vst [vmem:[%s2234_s26 + $0x18] sm:$0xff] (%p2744_p5), %v2253_v47 }
 0x76e   : > { %v2125_v6 = vrot.slane %v2124_v39, 1  ;;  %v2130_v43 = vadd.f32 %v2129_v3, %v2128_v1 }
 0x76f   : > { %v2137_v9 = vrot.slane %v2136_v41, 1  ;;  %v2142_v10 = vadd.f32 %v2141_v4, %v2140_v11 }
 0x770   : > { %v2126_v20 = vadd.f32 %v2125_v6, %v2124_v39  ;;  %v2131_v12 = vrot.slane %v2130_v43, 1 }
 0x771   : > { %v2138_v18 = vadd.f32 %v2137_v9, %v2136_v41  ;;  %v2143_v19 = vrot.slane %v2142_v10, 1 }
 0x772   : > { %v2145_v21 = vmul.f32 -0.5, %v2126_v20  ;;  %v2132_v23 = vadd.f32 %v2131_v12, %v2130_v43 }
 0x773   : > { %v2147_v24 = vmul.f32 -0.5, %v2138_v18  ;;  %v2144_v25 = vadd.f32 %v2143_v19, %v2142_v10 }
 0x774   : > { %v2146_v26 = vmul.f32 -0.5, %v2132_v23  ;;  %v2423_v28 = vadd.f32 -14.703016, %v2145_v21 }
 0x775   : > { %v2148_v27 = vmul.f32 -0.5, %v2144_v25  ;;  %v2425_v30 = vadd.f32 -14.703016, %v2147_v24 }
 0x776   : > { %v2424_v29 = vadd.f32 -14.703016, %v2146_v26 }
 0x777   : > { %v2426_v31 = vadd.f32 -14.703016, %v2148_v27 }
 0x778   : > { %v2157_v32 = vcombine.low %v2423_v28, %v2424_v29 }
 0x779   : > { %v2158_v33 = vcombine.low %v2425_v30, %v2426_v31 }
 0x77a   : > { %v2165_v57 = vrot.slane %v2157_v32, %v3123_v22 }
 0x77b   : > { %v2172_v34 = vrot.slane %v2158_v33, %v3123_v22 }
 0x77d   : > { %v2173_v13 = vcombine.low %v2165_v57, %v2172_v34  ;;  %2231 = sbr.rel (!%p2744_p5) target bundleno = 1931 (0x78b), region = 67 }
 0x77f   : > { %v2180_v8 = vrot.slane %v2173_v13, %v3123_v22  ;;  %v2249_v22 = vld [vmem:[%s2780_s23 + $0x8] sm:$0xff] (%p2744_p5) }
 0x780   : > { %2250 = vst [vmem:[%s2234_s26 + $0x8] sm:$0xff] (%p2744_p5), %v2249_v22 }
 0x781   : > { %2427 = vst.msk [vmem:[%s2780_s23 + $0x40] ss:$8 sm:$0xf] %vm3142_vm2, %v2180_v8 }
 0x788   : > { %v2263_v42 = vld [vmem:[%s2780_s23 + $0x40] sm:$0xff]  ;;  %v2265_v44 = vld [vmem:[%s2780_s23 + $0x48] sm:$0xff]  ;;  %v2267_v49 = vld [vmem:[%s2780_s23 + $0x50] sm:$0xff] }
 0x789   : > { %2264 = vst [vmem:[%s2234_s26 + $0x80] sm:$0xff] %v2263_v42  ;;  %v2269_v45 = vld [vmem:[%s2780_s23 + $0x58] sm:$0xff]  ;;  %2266 = vst [vmem:[%s2234_s26 + $0x88] sm:$0xff] %v2265_v44 }
 0x78a   : > { %2268 = vst [vmem:[%s2234_s26 + $0x90] sm:$0xff] %v2267_v49  ;;  %2270 = vst [vmem:[%s2234_s26 + $0x98] sm:$0xff] %v2269_v45 }
 0x78b PF: > { %p12_p10 = scmp.ge.s32.totalorder %s2731_s22, 4   ;;  %s3197_s18 = smov %s2675_s19 }
 0x78c   : > { %s3198_s19 = smov %s2742_s25  ;;  %s3199_s20 = smov %s2731_s22 }
 0x78d   :  { %14 = sbr.rel (!%p12_p10) target bundleno = 2 (0x2), region = 135 }

</bundles_post_ra>
